<compile_context>
chip_gen: v5e
topology: v5e:2x2
jax: 0.10.0
libtpu: 0.0.40
codegen_flags: <defaults>
</compile_context>

<pallas_src>
import math
from functools import partial

import jax
import jax.numpy as jnp
from jax import lax
from jax.experimental import pallas as pl
from jax.experimental.pallas import tpu as pltpu

EPS = 1e-5
F32 = jnp.float32
BF16 = jnp.bfloat16


# ---------------------------------------------------------------------------
# small helpers
# ---------------------------------------------------------------------------
def _partial_sums(h):
    """h: (rows, C) f32, rows % 8 == 0 -> (sum, sumsq) each of shape (8, C).

    Keeping 8 sublane-partial rows avoids a full cross-sublane reduction here and keeps
    the stats output block (1, 8, C) tile-aligned; the tiny final reduction over
    (tiles, 8) happens inside the consuming kernel (free VPU/XLU work).
    """
    rows, c = h.shape
    hg = h.reshape(rows // 8, 8, c)
    return jnp.sum(hg, axis=0), jnp.sum(hg * hg, axis=0)


def _scale_shift(s_ref, q_ref, g_ref, b_ref, inv_count):
    """Per-channel BN scale/shift (batch stats, biased var) from per-tile partials."""
    c = s_ref.shape[-1]
    s = jnp.sum(s_ref[...].reshape(-1, c), axis=0, keepdims=True)     # (1, C)
    q = jnp.sum(q_ref[...].reshape(-1, c), axis=0, keepdims=True)     # (1, C)
    mean = s * inv_count
    # E[x^2]-E[x]^2 in f32: fine for normalized ResNet activations; a centered two-pass
    # would be safer if reused generically.
    var = q * inv_count - mean * mean
    scale = g_ref[...] * lax.rsqrt(var + EPS)
    shift = b_ref[...] - mean * scale
    return scale, shift


def _vmem_cap_bytes():
    """Generation-aware scoped-VMEM cap (leaves 1/4 of physical VMEM as headroom)."""
    try:
        return max(int(pltpu.get_tpu_info().vmem_capacity_bytes) * 3 // 4, 32 << 20)
    except Exception:
        return 48 << 20        # conservative fallback: fits v7x's 64 MiB per-core VMEM


def _vmem_limit(blocks, cap, scratch_bytes=0):
    """Scoped-VMEM limit sized to the double-buffered per-tile working set."""
    per_step = sum(math.prod(s) * jnp.dtype(d).itemsize for s, d in blocks)
    return int(min(max(2 * per_step + scratch_bytes + (8 << 20), 32 << 20), cap))


def _pick_row_tile(m, target):
    """Largest multiple-of-16 divisor of m that is <= target, keeping >= 2 grid steps."""
    assert m % 16 == 0
    target = max(16, min(target, m))
    tm = 16
    for d in range(16, target + 1, 16):
        if m % d == 0:
            tm = d
    if tm == m and m >= 32 and (m // 2) % 16 == 0:
        tm = m // 2            # keep >= 2 grid steps so the BlockSpec pipeline overlaps
    return tm


def _row_spec(tm, c):
    return pl.BlockSpec((tm, c), lambda i: (i, 0))


def _whole_spec(shape):
    nd = len(shape)
    return pl.BlockSpec(tuple(shape), lambda i, _nd=nd: (0,) * _nd)


def _stats_spec(c):
    return pl.BlockSpec((1, 8, c), lambda i: (i, 0, 0))


# ---------------------------------------------------------------------------
# kernels
# ---------------------------------------------------------------------------
def _conv1_kernel(x_ref, w1_ref, h1_ref, s_ref, q_ref):
    # 1x1 conv == channel matmul; bf16 operands on the MXU, f32 accumulation.
    h = jnp.dot(x_ref[...], w1_ref[...], preferred_element_type=F32)      # (tm, P) f32
    h1_ref[...] = h.astype(BF16)         # bf16 inter-pass activation (halves HBM traffic)
    s, q = _partial_sums(h)              # BN1 stats on the f32 conv output
    s_ref[...] = s.reshape(s_ref.shape)
    q_ref[...] = q.reshape(q_ref.shape)


def _conv2_kernel(h1_ref, s1_ref, q1_ref, g1_ref, b1_ref, w2_ref,
                  h2_ref, s_ref, q_ref, pad_ref, *, H, W, P, inv_count):
    rows = H * W
    # BN1 (batch stats finalized in-kernel from per-tile partials) + ReLU, in f32.
    sc, sh = _scale_shift(s1_ref, q1_ref, g1_ref, b1_ref, inv_count)
    a = jnp.maximum(h1_ref[...].astype(F32) * sc.reshape(1, 1, 1, P)
                    + sh.reshape(1, 1, 1, P), 0.0)                        # (1,H,W,P) f32
    a16 = a.astype(BF16)                 # cast once; pad scratch + matmul operands bf16

    # Build the zero-padded image as a value (concat = vector relayout, no masked
    # sub-tile stores) and write it to the bf16 scratch with ONE full store.
    zrow = jnp.zeros((1, 1, W, P), BF16)
    zcol = jnp.zeros((1, H + 2, 1, P), BF16)
    padded = jnp.concatenate([zrow, a16, zrow], axis=1)                   # (1,H+2,W,  P)
    padded = jnp.concatenate([zcol, padded, zcol], axis=2)                # (1,H+2,W+2,P)
    pad_ref[...] = padded

    # 3x3 conv as 9 accumulating MXU matmuls: 3 sublane-shifted slabs (kx), each reused
    # for the 3 cheap ky row offsets.  No (rows, 9P) im2col temporary is materialized.
    acc = jnp.zeros((rows, P), F32)
    for kx in range(3):
        slab = pad_ref[:, :, kx:kx + W, :]                                # (1,H+2,W,P)
        for ky in range(3):
            tap = ky * 3 + kx
            part = slab[:, ky:ky + H, :, :].reshape(rows, P)
            acc = acc + jnp.dot(part, w2_ref[tap * P:(tap + 1) * P, :],
                                preferred_element_type=F32)

    h2_ref[...] = acc.reshape(1, H, W, P).astype(BF16)
    s, q = _partial_sums(acc)            # BN2 stats on the f32 conv output
    s_ref[...] = s.reshape(s_ref.shape)
    q_ref[...] = q.reshape(q_ref.shape)


def _conv3_kernel(h2_ref, s2_ref, q2_ref, g2_ref, b2_ref, w3_ref,
                  h3_ref, s_ref, q_ref, *, inv_count):
    sc, sh = _scale_shift(s2_ref, q2_ref, g2_ref, b2_ref, inv_count)
    a = jnp.maximum(h2_ref[...].astype(F32) * sc + sh, 0.0)               # (tm, P) f32
    h = jnp.dot(a.astype(BF16), w3_ref[...], preferred_element_type=F32)  # (tm, 4P) f32
    h3_ref[...] = h                      # keep f32: it feeds the f32 residual path
    s, q = _partial_sums(h)
    s_ref[...] = s.reshape(s_ref.shape)
    q_ref[...] = q.reshape(q_ref.shape)


def _bn3_residual_kernel(h3_ref, s3_ref, q3_ref, g3_ref, b3_ref, x_ref, out_ref, *,
                         inv_count):
    sc, sh = _scale_shift(s3_ref, q3_ref, g3_ref, b3_ref, inv_count)
    out_ref[...] = jnp.maximum(h3_ref[...] * sc + sh + x_ref[...], 0.0)


# ---------------------------------------------------------------------------
# wrapper
# ---------------------------------------------------------------------------
def bottleneck_forward(x_nhwc, w1, w2, w3, g1, b1, g2, b2, g3, b3, *, row_tile=None):
    """Bottleneck forward (training-mode BN, stride=1, downsample=None). NHWC in / out.

    w1: (Cin, P) bf16;  w2: (9*P, P) bf16 (ky-major HWIO flatten);  w3: (P, 4P) bf16.
    """
    N, H, W, Cin = x_nhwc.shape
    P = w1.shape[1]
    C4 = 4 * P
    assert Cin == C4, "residual add requires inplanes == 4 * planes (downsample=None)"
    assert W % 8 == 0, "W must be a multiple of 8 so (N,H,W,C)->(M,C) flattening is free"
    assert (H * W) % 8 == 0
    M = N * H * W
    assert M % 16 == 0
    cap = _vmem_cap_bytes()
    tm = _pick_row_tile(M, row_tile or (1024 if cap >= (80 << 20) else 512))
    n_row = M // tm
    inv_count = 1.0 / M
    par = ("parallel",)

    x_flat = x_nhwc.reshape(M, Cin).astype(F32)     # f32 copy for the residual add
    x16 = x_flat.astype(BF16)                       # bf16 copy halves pass-1's big read
    g1v, b1v = g1.reshape(1, P).astype(F32), b1.reshape(1, P).astype(F32)
    g2v, b2v = g2.reshape(1, P).astype(F32), b2.reshape(1, P).astype(F32)
    g3v, b3v = g3.reshape(1, C4).astype(F32), b3.reshape(1, C4).astype(F32)

    # ---- pass 1: conv1 (1x1) + partial BN1 stats ---------------------------------
    vlim1 = _vmem_limit([((tm, Cin), BF16), ((Cin, P), BF16), ((tm, P), BF16),
                         ((1, 8, P), F32), ((1, 8, P), F32)], cap)
    h1, s1, q1 = pl.pallas_call(
        _conv1_kernel,
        grid=(n_row,),
        in_specs=[_row_spec(tm, Cin), _whole_spec((Cin, P))],
        out_specs=(_row_spec(tm, P), _stats_spec(P), _stats_spec(P)),
        out_shape=(jax.ShapeDtypeStruct((M, P), BF16),
                   jax.ShapeDtypeStruct((n_row, 8, P), F32),
                   jax.ShapeDtypeStruct((n_row, 8, P), F32)),
        compiler_params=pltpu.CompilerParams(
            dimension_semantics=par, vmem_limit_bytes=vlim1),
    )(x16, w1)

    # ---- pass 2: bn1+relu (stats folded in-kernel) + 3x3 conv + BN2 stats --------
    h1_nhwc = h1.reshape(N, H, W, P)
    img_spec = pl.BlockSpec((1, H, W, P), lambda i: (i, 0, 0, 0))
    pad_scratch = pltpu.VMEM((1, H + 2, W + 2, P), BF16)
    vlim2 = _vmem_limit([((1, H, W, P), BF16), ((n_row, 8, P), F32),
                         ((n_row, 8, P), F32), ((1, P), F32), ((1, P), F32),
                         ((9 * P, P), BF16), ((1, H, W, P), BF16),
                         ((1, 8, P), F32), ((1, 8, P), F32)],
                        cap, scratch_bytes=(H + 2) * (W + 2) * P * 2)
    h2, s2, q2 = pl.pallas_call(
        partial(_conv2_kernel, H=H, W=W, P=P, inv_count=inv_count),
        grid=(N,),
        in_specs=[img_spec,
                  _whole_spec((n_row, 8, P)), _whole_spec((n_row, 8, P)),
                  _whole_spec((1, P)), _whole_spec((1, P)),
                  _whole_spec((9 * P, P))],
        out_specs=(img_spec, _stats_spec(P), _stats_spec(P)),
        out_shape=(jax.ShapeDtypeStruct((N, H, W, P), BF16),
                   jax.ShapeDtypeStruct((N, 8, P), F32),
                   jax.ShapeDtypeStruct((N, 8, P), F32)),
        scratch_shapes=[pad_scratch],
        compiler_params=pltpu.CompilerParams(
            dimension_semantics=par, vmem_limit_bytes=vlim2),
    )(h1_nhwc, s1, q1, g1v, b1v, w2)

    # ---- pass 3: bn2+relu (folded) + conv3 (1x1) + partial BN3 stats -------------
    h2_flat = h2.reshape(M, P)
    vlim3 = _vmem_limit([((tm, P), BF16), ((N, 8, P), F32), ((N, 8, P), F32),
                         ((1, P), F32), ((1, P), F32), ((P, C4), BF16),
                         ((tm, C4), F32), ((1, 8, C4), F32), ((1, 8, C4), F32)], cap)
    h3, s3, q3 = pl.pallas_call(
        partial(_conv3_kernel, inv_count=inv_count),
        grid=(n_row,),
        in_specs=[_row_spec(tm, P),
                  _whole_spec((N, 8, P)), _whole_spec((N, 8, P)),
                  _whole_spec((1, P)), _whole_spec((1, P)),
                  _whole_spec((P, C4))],
        out_specs=(_row_spec(tm, C4), _stats_spec(C4), _stats_spec(C4)),
        out_shape=(jax.ShapeDtypeStruct((M, C4), F32),
                   jax.ShapeDtypeStruct((n_row, 8, C4), F32),
                   jax.ShapeDtypeStruct((n_row, 8, C4), F32)),
        compiler_params=pltpu.CompilerParams(
            dimension_semantics=par, vmem_limit_bytes=vlim3),
    )(h2_flat, s2, q2, g2v, b2v, w3)

    # ---- pass 4: bn3 (folded) + residual add + relu ------------------------------
    vlim4 = _vmem_limit([((tm, C4), F32), ((n_row, 8, C4), F32), ((n_row, 8, C4), F32),
                         ((1, C4), F32), ((1, C4), F32), ((tm, C4), F32),
                         ((tm, C4), F32)], cap)
    out_flat = pl.pallas_call(
        partial(_bn3_residual_kernel, inv_count=inv_count),
        grid=(n_row,),
        in_specs=[_row_spec(tm, C4),
                  _whole_spec((n_row, 8, C4)), _whole_spec((n_row, 8, C4)),
                  _whole_spec((1, C4)), _whole_spec((1, C4)),
                  _row_spec(tm, C4)],
        out_specs=_row_spec(tm, C4),
        out_shape=jax.ShapeDtypeStruct((M, C4), F32),
        compiler_params=pltpu.CompilerParams(
            dimension_semantics=par, vmem_limit_bytes=vlim4),
    )(h3, s3, q3, g3v, b3v, x_flat)

    return out_flat.reshape(N, H, W, C4)


# ---------------------------------------------------------------------------
# pure-JAX reference (mirrors the kernel's precision policy: bf16 conv operands and
# bf16-stored h1/h2, f32 accumulation, f32 batch-stat BN / residual)
# ---------------------------------------------------------------------------
def reference(x, w1_hwio, w2_hwio, w3_hwio, g1, b1, g2, b2, g3, b3):
    def conv(h16, w, pad):
        dn = lax.conv_dimension_numbers(h16.shape, w.shape, ('NHWC', 'HWIO', 'NHWC'))
        return lax.conv_general_dilated(h16, w.astype(BF16), (1, 1), pad,
                                        dimension_numbers=dn,
                                        preferred_element_type=F32)

    def bn(h_stats, h_apply, gamma, beta):
        mean = jnp.mean(h_stats, axis=(0, 1, 2), keepdims=True)
        var = jnp.var(h_stats, axis=(0, 1, 2), keepdims=True)           # biased
        g = gamma.reshape(1, 1, 1, -1)
        b = beta.reshape(1, 1, 1, -1)
        return (h_apply - mean) / jnp.sqrt(var + EPS) * g + b

    h1 = conv(x.astype(BF16), w1_hwio, 'VALID')
    a1 = jax.nn.relu(bn(h1, h1.astype(BF16).astype(F32), g1, b1))
    h2 = conv(a1.astype(BF16), w2_hwio, 'SAME')
    a2 = jax.nn.relu(bn(h2, h2.astype(BF16).astype(F32), g2, b2))
    h3 = conv(a2.astype(BF16), w3_hwio, 'VALID')
    o = bn(h3, h3, g3, b3)
    return jax.nn.relu(o + x)


if __name__ == "__main__":
    key = jax.random.PRNGKey(0)
    ks = jax.random.split(key, 10)

    planes = 128                   # P; lane-dense channels (P=128, 4P=512)
    inplanes = 4 * planes          # required for the residual add (downsample=None)
    N, H, W = 2, 16, 16

    # Input built in PyTorch's NCHW convention, then moved to NHWC for the kernels.
    x_nchw = jax.random.normal(ks[0], (N, inplanes, H, W), F32)
    x_nhwc = jnp.transpose(x_nchw, (0, 2, 3, 1))

    # Conv weights in PyTorch layout (out, in, kh, kw).
    w1_t = 0.1 * jax.random.normal(ks[1], (planes, inplanes, 1, 1), F32)
    w2_t = 0.1 * jax.random.normal(ks[2], (planes, planes, 3, 3), F32)
    w3_t = 0.1 * jax.random.normal(ks[3], (planes * 4, planes, 1, 1), F32)

    # BatchNorm affine params.
    g1 = 0.5 + jax.random.uniform(ks[4], (planes,), F32)
    b1 = 0.1 * jax.random.normal(ks[5], (planes,), F32)
    g2 = 0.5 + jax.random.uniform(ks[6], (planes,), F32)
    b2 = 0.1 * jax.random.normal(ks[7], (planes,), F32)
    g3 = 0.5 + jax.random.uniform(ks[8], (planes * 4,), F32)
    b3 = 0.1 * jax.random.normal(ks[9], (planes * 4,), F32)

    # Kernel-side weight layouts (bf16 for the MXU; accumulation stays f32).
    w1 = jnp.transpose(w1_t[:, :, 0, 0]).astype(BF16)                   # (Cin, P)
    w2_hwio = jnp.transpose(w2_t, (2, 3, 1, 0))                         # (3,3,P,P) HWIO
    w2 = w2_hwio.reshape(9 * planes, planes).astype(BF16)               # (9P, P) ky-major
    w3 = jnp.transpose(w3_t[:, :, 0, 0]).astype(BF16)                   # (P, 4P)

    out = bottleneck_forward(x_nhwc, w1, w2, w3, g1, b1, g2, b2, g3, b3)
    out = jax.block_until_ready(out)

    ref = reference(x_nhwc,
                    jnp.transpose(w1_t, (2, 3, 1, 0)),
                    w2_hwio,
                    jnp.transpose(w3_t, (2, 3, 1, 0)),
                    g1, b1, g2, b2, g3, b3)
    ref = jax.block_until_ready(ref)

    assert out.shape == (N, H, W, inplanes)
    err_max = float(jnp.max(jnp.abs(out - ref)))
    err_mean = float(jnp.mean(jnp.abs(out - ref)))
    # Both pipelines quantize conv operands (and the h1/h2 intermediates) to bf16 and
    # recompute batch-norm statistics from their own results; tiny f32 ordering
    # differences flip a few bf16 roundings and each of the three batch norms
    # re-amplifies them, so ~1e-2 max deviation is the expected noise floor of this
    # comparison.  Structural bugs (wrong tap / padding / stats count) show up as O(1).
    assert err_max < 6e-2, f"max abs err {err_max}"
    assert err_mean < 8e-3, f"mean abs err {err_mean}"
    print("KERNEL_OK")
</pallas_src>

<mosaic_0001>
module attributes {stable_mosaic.version = 11 : i64} {
  func.func @_conv1_kernel(%arg0: i32, %arg1: memref<256x512xbf16, #tpu.memory_space<vmem>>, %arg2: memref<512x128xbf16, #tpu.memory_space<vmem>>, %arg3: memref<256x128xbf16, #tpu.memory_space<vmem>>, %arg4: memref<1x8x128xf32, #tpu.memory_space<vmem>>, %arg5: memref<1x8x128xf32, #tpu.memory_space<vmem>>) attributes {dimension_semantics = [#tpu.dimension_semantics<parallel>], iteration_bounds = array<i64: 2>, scalar_prefetch = 0 : i64, scratch_operands = 0 : i64, tpu.core_type = #tpu.core_type<tc>, window_params = [{transform_indices = @transform_0, window_bounds = array<i64: 256, 512>}, {pipeline_mode = #tpu.pipeline_mode<synchronous>, transform_indices = @transform_1, window_bounds = array<i64: 512, 128>}, {transform_indices = @transform_2, window_bounds = array<i64: 256, 128>}, {transform_indices = @transform_3, window_bounds = array<i64: 1, 8, 128>}, {transform_indices = @transform_4, window_bounds = array<i64: 1, 8, 128>}]} {
    %c0 = arith.constant 0 : index
    %c0_0 = arith.constant 0 : index
    %0 = vector.load %arg1[%c0, %c0_0] : memref<256x512xbf16, #tpu.memory_space<vmem>>, vector<256x512xbf16>
    %c0_1 = arith.constant 0 : index
    %c0_2 = arith.constant 0 : index
    %1 = vector.load %arg2[%c0_1, %c0_2] : memref<512x128xbf16, #tpu.memory_space<vmem>>, vector<512x128xbf16>
    %cst = arith.constant dense<0.000000e+00> : vector<256x128xf32>
    %2 = tpu.matmul %0, %1, %cst {dimension_numbers = #tpu.dot_dimension_numbers<[1], [0], [0], [1], [0, 0, 1, 1], [], []>} : vector<256x512xbf16>, vector<512x128xbf16>, vector<256x128xf32> -> vector<256x128xf32>
    %3 = arith.truncf %2 : vector<256x128xf32> to vector<256x128xbf16>
    %c0_3 = arith.constant 0 : index
    %c0_4 = arith.constant 0 : index
    %4 = vector.load %arg3[%c0_3, %c0_4] : memref<256x128xbf16, #tpu.memory_space<vmem>>, vector<256x128xbf16>
    tpu.vector_store %arg3[%c0_3, %c0_4], %3 {strides = array<i32>} : memref<256x128xbf16, #tpu.memory_space<vmem>>, vector<256x128xbf16>,
    %5 = vector.shape_cast %2 : vector<256x128xf32> to vector<32x8x128xf32>
    %cst_5 = arith.constant dense<0.000000e+00> : vector<8x128xf32>
    %6 = vector.multi_reduction <add>, %5, %cst_5 [0] : vector<32x8x128xf32> to vector<8x128xf32>
    %7 = arith.mulf %5, %5 : vector<32x8x128xf32>
    %cst_6 = arith.constant dense<0.000000e+00> : vector<8x128xf32>
    %8 = vector.multi_reduction <add>, %7, %cst_6 [0] : vector<32x8x128xf32> to vector<8x128xf32>
    %9 = vector.shape_cast %6 : vector<8x128xf32> to vector<1x8x128xf32>
    %c0_7 = arith.constant 0 : index
    %c0_8 = arith.constant 0 : index
    %c0_9 = arith.constant 0 : index
    %10 = vector.load %arg4[%c0_7, %c0_8, %c0_9] : memref<1x8x128xf32, #tpu.memory_space<vmem>>, vector<1x8x128xf32>
    tpu.vector_store %arg4[%c0_7, %c0_8, %c0_9], %9 {strides = array<i32>} : memref<1x8x128xf32, #tpu.memory_space<vmem>>, vector<1x8x128xf32>,
    %11 = vector.shape_cast %8 : vector<8x128xf32> to vector<1x8x128xf32>
    %c0_10 = arith.constant 0 : index
    %c0_11 = arith.constant 0 : index
    %c0_12 = arith.constant 0 : index
    %12 = vector.load %arg5[%c0_10, %c0_11, %c0_12] : memref<1x8x128xf32, #tpu.memory_space<vmem>>, vector<1x8x128xf32>
    tpu.vector_store %arg5[%c0_10, %c0_11, %c0_12], %11 {strides = array<i32>} : memref<1x8x128xf32, #tpu.memory_space<vmem>>, vector<1x8x128xf32>,
    return
  }
  func.func @transform_0(%arg0: i32) -> (i32, i32) {
    %c0_i32 = arith.constant 0 : i32
    %c0_i32_0 = arith.constant 0 : i32
    return %arg0, %c0_i32 : i32, i32
  }
  func.func @transform_1(%arg0: i32) -> (i32, i32) {
    %c0_i32 = arith.constant 0 : i32
    %c0_i32_0 = arith.constant 0 : i32
    %c0_i32_1 = arith.constant 0 : i32
    return %c0_i32, %c0_i32_0 : i32, i32
  }
  func.func @transform_2(%arg0: i32) -> (i32, i32) {
    %c0_i32 = arith.constant 0 : i32
    %c0_i32_0 = arith.constant 0 : i32
    return %arg0, %c0_i32 : i32, i32
  }
  func.func @transform_3(%arg0: i32) -> (i32, i32, i32) {
    %c0_i32 = arith.constant 0 : i32
    %c0_i32_0 = arith.constant 0 : i32
    %c0_i32_1 = arith.constant 0 : i32
    return %arg0, %c0_i32, %c0_i32_0 : i32, i32, i32
  }
  func.func @transform_4(%arg0: i32) -> (i32, i32, i32) {
    %c0_i32 = arith.constant 0 : i32
    %c0_i32_0 = arith.constant 0 : i32
    %c0_i32_1 = arith.constant 0 : i32
    return %arg0, %c0_i32, %c0_i32_0 : i32, i32, i32
  }
}

</mosaic_0001>

<bundles_post_ra>
// kernel: tpu_custom_call.1
= control target key start
LH: loop header
LB: loop body
LE: loop exit
PB: predicated region body
PF: predicated region fallthrough
CT: control target
= control target key end

     0   :  { %10 = vsyncpa [#allocation3], 0  ;;  %s2876_s0 = inlined_call_operand.hbm [shape: bf16[512,512], index: 0, kind: input, shape index: {}]   ;;  %s2877_s1 = inlined_call_operand.hbm [shape: bf16[512,128], index: 1, kind: input, shape index: {}]   ;;  %s2878_s2 = inlined_call_operand.hbm [shape: bf16[512,128], index: 2, kind: output, shape index: {0}]   ;;  %s2879_s3 = inlined_call_operand.hbm [shape: f32[2,8,128], index: 3, kind: output, shape index: {1}]   ;;  %s2880_s4 = inlined_call_operand.hbm [shape: f32[2,8,128], index: 4, kind: output, shape index: {2}]  }
   0x1   :  { %12 = vsyncpa [#allocation3 + $0x1], 0 }
   0x2   :  { %13 = vsyncpa [#allocation6], 0 }
   0x3   :  { %14 = vsyncpa [#allocation4], 0 }
   0x4   :  { %16 = vsyncpa [#allocation4 + $0x1], 0 }
   0x5   :  { %17 = vsyncpa [#allocation9], 0 }
   0x6   :  { %19 = vsyncpa [#allocation9 + $0x1], 0  ;;  %s2510_s15 = smov 0   ;;  %s2512_s16 = smov 0  }
   0x7   :  { %s2514_s17 = smov 0   ;;  %s2516_s18 = smov 0  }
   0x8 LB: > { %s2531_s19 = sadd.s32 4294967295, %s2476_s18   ;;  %s2881_s20 = sadd.s32 4294967294, %s2476_s18   ;;  %s2476_s18 = sphi %s2516_s18, %s2892_s18   ;;  %s2472_s17 = sphi %s2514_s17, %s2891_s17   ;;  %s2468_s16 = sphi %s2512_s16, %s2890_s16   ;;  %s2464_s15 = sphi %s2510_s15, %s2889_s15  }
   0x9   : > { %p45_p0 = scmp.ne.s32.totalorder %s2468_s16, %s2464_s15  ;;  %p46_p1 = scmp.eq.s32.totalorder %s2531_s19, 0 }
   0xa   : > { %p90_p2 = scmp.eq.s32.totalorder %s2531_s19, 1  ;;  %p96_p3 = scmp.eq.s32.totalorder %s2881_s20, 1 }
   0xb   : > { %p2542_p4 = por %p46_p1, %p45_p0  ;;  %p1613_p5 = scmp.ge.s32.totalorder %s2476_s18, 1 }
   0xc   : > { %p2547_p6 = por %p96_p3, %p45_p0  ;;  %p155_p7 = scmp.lt.s32.totalorder %s2476_s18, 3 }
   0xd   : > { %s166_s25 = sshll.u32 %s2877_s1, 4  ;;  %s2478_s27 = smov [#allocation5]   ;;  %s167_s25 = int_to_ptr.hbm [resolvable:$true] %s166_s25 }
   0xe   : > { %p2555_p8 = pnand %p1613_p5, %p155_p7  ;;  %s168_s28 = sshll.u32 %s2478_s27, 4  ;;  %s169_s28 = int_to_ptr.vmem [resolvable:$true] %s168_s28 }
   0xf   : > { %s2565_s29 = sadd.s32 1, %s2476_s18   ;;  %s2479_s30 = smov 64  }
  0x10   : > { %p2225_p9 = pneg %p2555_p8  ;;  %s2480_s5 = smov 4  }
  0x11   : > { %s29_s6 = ssub.s32 %s2476_s18, %s2565_s29  ;;  %s32_s7 = sadd.s32 1, %s2472_s17 }
  0x12   : > { %p2226_p10 = pnand %p2225_p9, %p46_p1  ;;  %p30_p12 = scmp.eq.s32.totalorder %s29_s6, 0 }
  0x13   : > { %p39_p13 = scmp.ne.s32.totalorder %s2472_s17, %s2468_s16  ;;  %p40_p0 = scmp.eq.s32.totalorder %s2476_s18, 0 }
  0x14   : > { %2228 = dma.hbm_to_vmem [thread:$0]  (!%p2226_p10), %s167_s25, 4096, %s169_s28, [#allocation6], %s2479_s30, %s2479_s30, %s2480_s5  }
  0x15   : > { %p2244_p3 = scmp.lt.s32.totalorder %s2476_s18, 2  ;;  %p41_p5 = por %p40_p0, %p39_p13 }
  0x16   : > { %s2575_s8 = scalar_select %p30_p12, %s2472_s17, %s32_s7  }
  0x17   : > { %p2579_p7 = por %p90_p2, %p39_p13  ;;  %s182_s10 = sand.u32 1, %s2472_s17  }
  0x18   : > { %s2020_s11 = sshll.u32 %s2476_s18, 9  ;;  %s1616_s12 = sshll.u32 %s182_s10, 9 }
  0x19   : > { %s192_s23 = scalar_lea.hbm %s2876_s0, %s2020_s11  ;;  %s186_s25 = scalar_lea.vmem [#allocation2], %s1616_s12 }
  0x1a   : > { %s193_s24 = sshll.u32 %s192_s23, 4  ;;  %s195_s27 = sshll.u32 %s186_s25, 4  ;;  %s194_s24 = int_to_ptr.hbm [resolvable:$true] %s193_s24  ;;  %s196_s27 = int_to_ptr.vmem [resolvable:$true] %s195_s27 }
  0x1b   : > { %p2590_p9 = pnand %p2244_p3, %p41_p5  ;;  %s183_s30 = scalar_lea.sflag [#allocation3], %s182_s10 }
  0x1c   : > { %s2316_s5 = sshra.s32 %s194_s24, 4  ;;  %s2323_s12 = scalar_lea.hbm %s2876_s0, 1024  ;;  %s2317_s5 = int_to_ptr.hbm [resolvable:$true] %s2316_s5 }
  0x1d   : > { %s2318_s6 = scalar_lea.hbm %s2317_s5, 512  ;;  %p2320_p10 = pneg %p2590_p9 }
  0x1e   : > { %p2319_p2 = scmp.ne.s32.totalorder %s2317_s5, %s2318_s6  ;;  %p2324_p0 = scmp.lt.s32.totalorder %s2317_s5, %s2876_s0 }
  0x1f   : > { %p2325_p3 = scmp.lt.s32.totalorder %s2323_s12, %s2318_s6 }
  0x20   : > { %p2321_p12 = pnand %p2320_p10, %p2319_p2 }
  0x21   : > { %p2326_p5 = por %p2325_p3, %p2324_p0 }
  0x22   : > { %p2322_p13 = pneg %p2321_p12 }
  0x24   : > { %p2327_p11 = pnand %p2326_p5, %p2322_p13 }
  0x26   : > { %2330 = shalt.err (!%p2327_p11)
}
  0x27   : > { %s2481_s10 = smov 256   ;;  %s2482_s23 = smov 16  }
  0x28   : > { %2232 = dma.hbm_to_vmem [thread:$0]  (!%p2590_p9), %s194_s24, 8192, %s196_s27, %s183_s30, %s2481_s10, %s2481_s10, %s2482_s23  }
  0x29   : > { %207 = sbr.rel (%p2555_p8) target bundleno = 503 (0x1f7), region = 28  ;;  %s2607_s25 = sand.u32 (!%p2555_p8), 1, %s2468_s16  }
  0x2a   : > { %s1621_s7 = sshll.u32 (!%p2555_p8), %s2607_s25, 9  ;;  %s210_s5 = scalar_lea.sflag (!%p2555_p8), [#allocation3], %s2607_s25 }
  0x2b   : > { %s2611_s6 = scalar_lea.vmem (!%p2555_p8), [#allocation2], %s1621_s7 }
  0x2e   : > { %2447 = dma.done.wait (%p2542_p4), %s210_s5, 8192  }
  0x2f   : > { %2449 = vsyncadd (%p2542_p4), %s210_s5, 4294959104 }
  0x30   : > { %2451 = dma.done.wait (%p46_p1), [#allocation6], 4096  }
  0x31   : > { %2453 = vsyncadd (%p46_p1), [#allocation6], 4294963200  ;;  %v2092_v0 = vld [vmem:[#allocation5 + $0x38] sm:$0xff]  ;;  %v2091_v4 = vld [vmem:[#allocation5 + $0x30] sm:$0xff]  ;;  %s1623_s21 = sshll.u32 %s2607_s25, 7  ;;  %s1624_s24 = sshll.u32 %s2607_s25, 3 }
  0x32   : > { %v2100_v1 = vld [vmem:[#allocation5 + $0x78] sm:$0xff]  ;;  %896 = vmatpush.bf16.msra.mxu0 %v2092_v0  ;;  %v2099_v5 = vld [vmem:[#allocation5 + $0x70] sm:$0xff]  ;;  %v2090_v8 = vld [vmem:[#allocation5 + $0x28] sm:$0xff]  ;;  %s2702_s26 = scalar_lea.vmem [#allocation7], %s1623_s21  ;;  %s2015_s27 = sshll.u32 %s2531_s19, 3 }
  0x33   : > { %v2108_v2 = vld [vmem:[#allocation5 + $0xb8] sm:$0xff]  ;;  %985 = vmatpush.bf16.msra.mxu1 %v2100_v1  ;;  %v2107_v6 = vld [vmem:[#allocation5 + $0xb0] sm:$0xff]  ;;  %v2098_v9 = vld [vmem:[#allocation5 + $0x68] sm:$0xff]  ;;  %s2117_s28 = sshll.u32 %s2531_s19, 7  ;;  %s1450_s12 = scalar_lea.hbm %s2879_s3, %s2015_s27 }
  0x34   : > { %v2116_v3 = vld [vmem:[#allocation5 + $0xf8] sm:$0xff]  ;;  %1074 = vmatpush.bf16.msra.mxu2 %v2108_v2  ;;  %v2115_v7 = vld [vmem:[#allocation5 + $0xf0] sm:$0xff]  ;;  %v2106_v10 = vld [vmem:[#allocation5 + $0xa8] sm:$0xff]  ;;  %s1417_s13 = sand.u32 1, %s2531_s19   ;;  %s246_s14 = scalar_lea.vmem [#allocation8], %s1624_s24 }
  0x35   : > { %1163 = vmatpush.bf16.msra.mxu3 %v2116_v3  ;;  %v2114_v11 = vld [vmem:[#allocation5 + $0xe8] sm:$0xff]  ;;  %v2089_v12 = vld [vmem:[#allocation5 + $0x20] sm:$0xff]  ;;  %v2088_v16 = vld [vmem:[#allocation5 + $0x18] sm:$0xff]  ;;  %s1452_s10 = sshll.u32 %s246_s14, 4  ;;  %s1434_s5 = scalar_lea.hbm %s2878_s2, %s2117_s28  ;;  %s2794_s10 = int_to_ptr.vmem [resolvable:$true] %s1452_s10 }
  0x36   : > { %897 = vmatpush.bf16.msra.mxu0 %v2091_v4  ;;  %v2097_v13 = vld [vmem:[#allocation5 + $0x60] sm:$0xff]  ;;  %v2096_v17 = vld [vmem:[#allocation5 + $0x58] sm:$0xff]  ;;  %v2087_v20 = vld [vmem:[#allocation5 + $0x10] sm:$0xff]  ;;  %s1464_s11 = scalar_lea.hbm %s2880_s4, %s2015_s27  ;;  %s1435_s20 = sshll.u32 %s2702_s26, 4  ;;  %s2801_s20 = int_to_ptr.vmem [resolvable:$true] %s1435_s20 }
  0x37   : > { %986 = vmatpush.bf16.msra.mxu1 %v2099_v5  ;;  %v2105_v14 = vld [vmem:[#allocation5 + $0xa0] sm:$0xff]  ;;  %v2104_v18 = vld [vmem:[#allocation5 + $0x98] sm:$0xff]  ;;  %v2095_v21 = vld [vmem:[#allocation5 + $0x50] sm:$0xff]  ;;  %s1437_s23 = sshll.u32 %s1434_s5, 4  ;;  %s1468_s28 = sshll.u32 %s1464_s11, 4  ;;  %s2803_s23 = int_to_ptr.hbm [resolvable:$true] %s1437_s23  ;;  %s2808_s28 = int_to_ptr.hbm [resolvable:$true] %s1468_s28 }
  0x38   : > { %1075 = vmatpush.bf16.msra.mxu2 %v2107_v6  ;;  %v2113_v15 = vld [vmem:[#allocation5 + $0xe0] sm:$0xff]  ;;  %v2112_v19 = vld [vmem:[#allocation5 + $0xd8] sm:$0xff]  ;;  %v2103_v22 = vld [vmem:[#allocation5 + $0x90] sm:$0xff]  ;;  %s253_s27 = scalar_lea.vmem [#allocation10], %s1624_s24  ;;  %s2812_s7 = scalar_lea.sflag [#allocation9], %s1417_s13 }
  0x39   : > { %1164 = vmatpush.bf16.msra.mxu3 %v2115_v7  ;;  %v2111_v23 = vld [vmem:[#allocation5 + $0xd0] sm:$0xff]  ;;  %v2086_v24 = vld [vmem:[#allocation5 + $0x8] sm:$0xff]  ;;  %v2085_v28 = vld [vmem:[#allocation5] sm:$0xff] }
  0x3a   : > { %898 = vmatpush.bf16.msra.mxu0 %v2090_v8  ;;  %v2094_v25 = vld [vmem:[#allocation5 + $0x48] sm:$0xff]  ;;  %v2093_v29 = vld [vmem:[#allocation5 + $0x40] sm:$0xff]  ;;  %v2023_v33 = vld [vmem:[%s2611_s6 + $0xc] sm:$0xf0] }
  0x3b   : > { %987 = vmatpush.bf16.msra.mxu1 %v2098_v9  ;;  %v2102_v26 = vld [vmem:[#allocation5 + $0x88] sm:$0xff]  ;;  %v2101_v30 = vld [vmem:[#allocation5 + $0x80] sm:$0xff]  ;;  %v1630_v35 = vld [vmem:[%s2611_s6 + $0x10] sm:$0xf0] }
  0x3c   : > { %1076 = vmatpush.bf16.msra.mxu2 %v2106_v10  ;;  %v2110_v27 = vld [vmem:[#allocation5 + $0xc8] sm:$0xff]  ;;  %v2109_v31 = vld [vmem:[#allocation5 + $0xc0] sm:$0xff]  ;;  %v2024_v37 = vld [vmem:[%s2611_s6 + $0x14] sm:$0xf0] }
  0x3d   : > { %1165 = vmatpush.bf16.msra.mxu3 %v2114_v11  ;;  %v1628_v32 = vld [vmem:[%s2611_s6] sm:$0xf]  ;;  %v2021_v34 = vld [vmem:[%s2611_s6 + $0x4] sm:$0xf]  ;;  %v1636_v36 = vld [vmem:[%s2611_s6 + $0x8] sm:$0xf] }
  0x3e   : > { %899 = vmatpush.bf16.msra.mxu0 %v2089_v12  ;;  %v2022_v38 = vld [vmem:[%s2611_s6 + $0xc] sm:$0xf]  ;;  %v1638_v39 = vld [vmem:[%s2611_s6 + $0x18] sm:$0xf0]  ;;  %v1629_v40 = vor.u32 %v2023_v33, %v1628_v32  ;;  %v1633_v41 = vor.u32 %v2021_v34, %v1630_v35  ;;  %v1637_v42 = vor.u32 %v2024_v37, %v1636_v36  ;;  %v1644_v44 = vld [vmem:[%s2611_s6 + $0x20] sm:$0xf] }
  0x3f   : > { %988 = vmatpush.bf16.msra.mxu1 %v2097_v13  ;;  %v1641_v43 = vor.u32 %v2022_v38, %v1638_v39  ;;  %v2027_v45 = vld [vmem:[%s2611_s6 + $0x2c] sm:$0xf0]  ;;  %v2025_v46 = vld [vmem:[%s2611_s6 + $0x24] sm:$0xf]  ;;  %v1646_v47 = vld [vmem:[%s2611_s6 + $0x30] sm:$0xf0] }
  0x40   : > { %1077 = vmatpush.bf16.msra.mxu2 %v2105_v14  ;;  %v1652_v48 = vld [vmem:[%s2611_s6 + $0x28] sm:$0xf]  ;;  %v2028_v49 = vld [vmem:[%s2611_s6 + $0x34] sm:$0xf0]  ;;  %v2026_v50 = vld [vmem:[%s2611_s6 + $0x2c] sm:$0xf]  ;;  %v1645_v52 = vor.u32 %v2027_v45, %v1644_v44  ;;  %v1649_v53 = vor.u32 %v2025_v46, %v1646_v47 }
  0x41   : > { %1166 = vmatpush.bf16.msra.mxu3 %v2113_v15  ;;  %v1654_v51 = vld [vmem:[%s2611_s6 + $0x38] sm:$0xf0]  ;;  %v1653_v54 = vor.u32 %v2028_v49, %v1652_v48  ;;  %v1660_v56 = vld [vmem:[%s2611_s6 + $0x40] sm:$0xf]  ;;  %v2031_v57 = vld [vmem:[%s2611_s6 + $0x4c] sm:$0xf0] }
  0x42   : > { %900 = vmatpush.bf16.msra.mxu0 %v2088_v16  ;;  %v1657_v55 = vor.u32 %v2026_v50, %v1654_v51  ;;  %v2029_v58 = vld [vmem:[%s2611_s6 + $0x44] sm:$0xf]  ;;  %v1662_v59 = vld [vmem:[%s2611_s6 + $0x50] sm:$0xf0]  ;;  %v1668_v60 = vld [vmem:[%s2611_s6 + $0x48] sm:$0xf]  ;;  %v1661_v0 = vor.u32 %v2031_v57, %v1660_v56 }
  0x43   : > { %989 = vmatpush.bf16.msra.mxu1 %v2096_v17  ;;  %v2032_v61 = vld [vmem:[%s2611_s6 + $0x54] sm:$0xf0]  ;;  %v2030_v62 = vld [vmem:[%s2611_s6 + $0x4c] sm:$0xf]  ;;  %v1670_v63 = vld [vmem:[%s2611_s6 + $0x58] sm:$0xf0]  ;;  %v1665_v1 = vor.u32 %v2029_v58, %v1662_v59 }
  0x44   : > { %1078 = vmatpush.bf16.msra.mxu2 %v2104_v18  ;;  %v1669_v2 = vor.u32 %v2032_v61, %v1668_v60  ;;  %v1673_v3 = vor.u32 %v2030_v62, %v1670_v63  ;;  %v1676_v4 = vld [vmem:[%s2611_s6 + $0x60] sm:$0xf]  ;;  %v2035_v5 = vld [vmem:[%s2611_s6 + $0x6c] sm:$0xf0]  ;;  %v2033_v6 = vld [vmem:[%s2611_s6 + $0x64] sm:$0xf] }
  0x45   : > { %1167 = vmatpush.bf16.msra.mxu3 %v2112_v19  ;;  %v1678_v7 = vld [vmem:[%s2611_s6 + $0x70] sm:$0xf0]  ;;  %v1684_v8 = vld [vmem:[%s2611_s6 + $0x68] sm:$0xf]  ;;  %v2036_v9 = vld [vmem:[%s2611_s6 + $0x74] sm:$0xf0]  ;;  %v1677_v12 = vor.u32 %v2035_v5, %v1676_v4 }
  0x46   : > { %901 = vmatpush.bf16.msra.mxu0 %v2087_v20  ;;  %v2034_v10 = vld [vmem:[%s2611_s6 + $0x6c] sm:$0xf]  ;;  %v1686_v11 = vld [vmem:[%s2611_s6 + $0x78] sm:$0xf0]  ;;  %v1681_v13 = vor.u32 %v2033_v6, %v1678_v7  ;;  %v1685_v14 = vor.u32 %v2036_v9, %v1684_v8  ;;  %v1692_v16 = vld [vmem:[%s2611_s6 + $0x80] sm:$0xf] }
  0x47   : > { %990 = vmatpush.bf16.msra.mxu1 %v2095_v21  ;;  %v1689_v15 = vor.u32 %v2034_v10, %v1686_v11  ;;  %v2039_v17 = vld [vmem:[%s2611_s6 + $0x8c] sm:$0xf0]  ;;  %v2037_v18 = vld [vmem:[%s2611_s6 + $0x84] sm:$0xf]  ;;  %v1694_v19 = vld [vmem:[%s2611_s6 + $0x90] sm:$0xf0] }
  0x48   : > { %1079 = vmatpush.bf16.msra.mxu2 %v2103_v22  ;;  %v1700_v20 = vld [vmem:[%s2611_s6 + $0x88] sm:$0xf]  ;;  %v2040_v21 = vld [vmem:[%s2611_s6 + $0x94] sm:$0xf0]  ;;  %v2038_v22 = vld [vmem:[%s2611_s6 + $0x8c] sm:$0xf] }
  0x49   : > { %1168 = vmatpush.bf16.msra.mxu3 %v2111_v23  ;;  %v1702_v23 = vld [vmem:[%s2611_s6 + $0x98] sm:$0xf0]  ;;  %v1716_v32 = vld [vmem:[%s2611_s6 + $0xa8] sm:$0xf]  ;;  %v2044_v33 = vld [vmem:[%s2611_s6 + $0xb4] sm:$0xf0] }
  0x4a   : > { %902 = vmatpush.bf16.msra.mxu0 %v2086_v24  ;;  %v1693_v24 = vor.u32 %v2039_v17, %v1692_v16  ;;  %v2042_v34 = vld [vmem:[%s2611_s6 + $0xac] sm:$0xf]  ;;  %v1718_v35 = vld [vmem:[%s2611_s6 + $0xb8] sm:$0xf0]  ;;  %v1717_v38 = vor.u32 %v2044_v33, %v1716_v32  ;;  %v1732_v44 = vld [vmem:[%s2611_s6 + $0xc8] sm:$0xf] }
  0x4b   : > { %991 = vmatpush.bf16.msra.mxu1 %v2094_v25  ;;  %v1697_v25 = vor.u32 %v2037_v18, %v1694_v19  ;;  %v1721_v39 = vor.u32 %v2042_v34, %v1718_v35  ;;  %v2048_v45 = vld [vmem:[%s2611_s6 + $0xd4] sm:$0xf0]  ;;  %v2046_v46 = vld [vmem:[%s2611_s6 + $0xcc] sm:$0xf]  ;;  %v1734_v47 = vld [vmem:[%s2611_s6 + $0xd8] sm:$0xf0] }
  0x4c   : > { %1080 = vmatpush.bf16.msra.mxu2 %v2102_v26  ;;  %v1701_v26 = vor.u32 %v2040_v21, %v1700_v20  ;;  %v1733_v50 = vor.u32 %v2048_v45, %v1732_v44  ;;  %v1737_v51 = vor.u32 %v2046_v46, %v1734_v47  ;;  %v1748_v56 = vld [vmem:[%s2611_s6 + $0xe8] sm:$0xf]  ;;  %v2052_v57 = vld [vmem:[%s2611_s6 + $0xf4] sm:$0xf0]  ;;  %v2050_v58 = vld [vmem:[%s2611_s6 + $0xec] sm:$0xf] }
  0x4d   : > { %1169 = vmatpush.bf16.msra.mxu3 %v2110_v27  ;;  %v1705_v27 = vor.u32 %v2038_v22, %v1702_v23  ;;  %v1750_v59 = vld [vmem:[%s2611_s6 + $0xf8] sm:$0xf0]  ;;  %v1749_v62 = vor.u32 %v2052_v57, %v1748_v56  ;;  %v1764_v4 = vld [vmem:[%s2611_s6 + $0x108] sm:$0xf]  ;;  %v2056_v5 = vld [vmem:[%s2611_s6 + $0x114] sm:$0xf0] }
  0x4e   : > { %903 = vmatpush.bf16.msra.mxu0 %v2085_v28  ;;  %v1708_v28 = vld [vmem:[%s2611_s6 + $0xa0] sm:$0xf]  ;;  %v1753_v63 = vor.u32 %v2050_v58, %v1750_v59  ;;  %v2054_v6 = vld [vmem:[%s2611_s6 + $0x10c] sm:$0xf]  ;;  %v1766_v7 = vld [vmem:[%s2611_s6 + $0x118] sm:$0xf0] }
  0x4f   : > { %992 = vmatpush.bf16.msra.mxu1 %v2093_v29  ;;  %v2043_v29 = vld [vmem:[%s2611_s6 + $0xac] sm:$0xf0]  ;;  %v1772_v20 = vld [vmem:[%s2611_s6 + $0x120] sm:$0xf]  ;;  %v2057_v22 = vld [vmem:[%s2611_s6 + $0x124] sm:$0xf] }
  0x50   : > { %1081 = vmatpush.bf16.msra.mxu2 %v2101_v30  ;;  %v2041_v30 = vld [vmem:[%s2611_s6 + $0xa4] sm:$0xf]  ;;  %v1709_v36 = vor.u32 %v2043_v29, %v1708_v28  ;;  %v2059_v21 = vld [vmem:[%s2611_s6 + $0x12c] sm:$0xf0]  ;;  %v1774_v23 = vld [vmem:[%s2611_s6 + $0x130] sm:$0xf0] }
  0x51   : > { %1170 = vmatpush.bf16.msra.mxu3 %v2109_v31  ;;  %904 = vmatmul.bf16.vlgmr.msra.gmra.mxu0 %v1629_v40  ;;  %v1710_v31 = vld [vmem:[%s2611_s6 + $0xb0] sm:$0xf0]  ;;  %v1724_v40 = vld [vmem:[%s2611_s6 + $0xc0] sm:$0xf]  ;;  %v1773_v32 = vor.u32 %v2059_v21, %v1772_v20  ;;  %v1777_v33 = vor.u32 %v2057_v22, %v1774_v23  ;;  %v2061_v56 = vld [vmem:[%s2611_s6 + $0x144] sm:$0xf] }
  0x52   : > { %993 = vmatmul.bf16.vlgmr.msra.gmra.mxu1 %v1633_v41  ;;  %v1713_v37 = vor.u32 %v2041_v30, %v1710_v31  ;;  %v2047_v41 = vld [vmem:[%s2611_s6 + $0xcc] sm:$0xf0]  ;;  %v1790_v57 = vld [vmem:[%s2611_s6 + $0x150] sm:$0xf0]  ;;  %v1796_v58 = vld [vmem:[%s2611_s6 + $0x148] sm:$0xf] }
  0x53   : > { %1082 = vmatmul.bf16.vlgmr.msra.gmra.mxu2 %v1637_v42  ;;  %v2045_v42 = vld [vmem:[%s2611_s6 + $0xc4] sm:$0xf]  ;;  %v1725_v48 = vor.u32 %v2047_v41, %v1724_v40  ;;  %v2064_v59 = vld [vmem:[%s2611_s6 + $0x154] sm:$0xf0]  ;;  %v1804_v21 = vld [vmem:[%s2611_s6 + $0x160] sm:$0xf] }
  0x54   : > { %1171 = vmatmul.bf16.vlgmr.msra.gmra.mxu3 %v1641_v43  ;;  %v1726_v43 = vld [vmem:[%s2611_s6 + $0xd0] sm:$0xf0]  ;;  %v2067_v22 = vld [vmem:[%s2611_s6 + $0x16c] sm:$0xf0] }
  0x55   : > { %v1729_v49 = vor.u32 %v2045_v42, %v1726_v43 }
  0x61   : > { %909 = vmatmul.bf16.gmra.mxu0 %v1645_v52  ;;  %v1740_v52 = vld [vmem:[%s2611_s6 + $0xe0] sm:$0xf] }
  0x62   : > { %998 = vmatmul.bf16.gmra.mxu1 %v1649_v53  ;;  %v2051_v53 = vld [vmem:[%s2611_s6 + $0xec] sm:$0xf0] }
  0x63   : > { %1087 = vmatmul.bf16.gmra.mxu2 %v1653_v54  ;;  %v2049_v54 = vld [vmem:[%s2611_s6 + $0xe4] sm:$0xf]  ;;  %v1741_v60 = vor.u32 %v2051_v53, %v1740_v52  ;;  %v1788_v52 = vld [vmem:[%s2611_s6 + $0x140] sm:$0xf]  ;;  %v2063_v53 = vld [vmem:[%s2611_s6 + $0x14c] sm:$0xf0] }
  0x64   : > { %1176 = vmatmul.bf16.gmra.mxu3 %v1657_v55  ;;  %v1742_v55 = vld [vmem:[%s2611_s6 + $0xf0] sm:$0xf0] }
  0x65   : > { %v1745_v61 = vor.u32 %v2049_v54, %v1742_v55 }
  0x71   : > { %914 = vmatmul.bf16.gmra.mxu0 %v1661_v0  ;;  %v1756_v0 = vld [vmem:[%s2611_s6 + $0x100] sm:$0xf] }
  0x72   : > { %1003 = vmatmul.bf16.gmra.mxu1 %v1665_v1  ;;  %v2055_v1 = vld [vmem:[%s2611_s6 + $0x10c] sm:$0xf0] }
  0x73   : > { %1092 = vmatmul.bf16.gmra.mxu2 %v1669_v2  ;;  %v2053_v2 = vld [vmem:[%s2611_s6 + $0x104] sm:$0xf]  ;;  %v1757_v8 = vor.u32 %v2055_v1, %v1756_v0 }
  0x74   : > { %1181 = vmatmul.bf16.gmra.mxu3 %v1673_v3  ;;  %v1758_v3 = vld [vmem:[%s2611_s6 + $0x110] sm:$0xf0] }
  0x75   : > { %v1761_v9 = vor.u32 %v2053_v2, %v1758_v3  ;;  %v1789_v2 = vor.u32 %v2063_v53, %v1788_v52  ;;  %v1793_v3 = vor.u32 %v2061_v56, %v1790_v57 }
  0x81   : > { %919 = vmatmul.bf16.gmra.mxu0 %v1677_v12  ;;  %v1765_v12 = vor.u32 %v2056_v5, %v1764_v4 }
  0x82   : > { %1008 = vmatmul.bf16.gmra.mxu1 %v1681_v13  ;;  %v1769_v13 = vor.u32 %v2054_v6, %v1766_v7  ;;  %v1797_v7 = vor.u32 %v2064_v59, %v1796_v58  ;;  %v2069_v58 = vld [vmem:[%s2611_s6 + $0x184] sm:$0xf]  ;;  %v1822_v59 = vld [vmem:[%s2611_s6 + $0x190] sm:$0xf0] }
  0x83   : > { %1097 = vmatmul.bf16.gmra.mxu2 %v1685_v14 }
  0x84   : > { %1186 = vmatmul.bf16.gmra.mxu3 %v1689_v15 }
  0x91   : > { %924 = vmatmul.bf16.gmra.mxu0 %v1693_v24  ;;  %v1780_v24 = vld [vmem:[%s2611_s6 + $0x128] sm:$0xf] }
  0x92   : > { %1013 = vmatmul.bf16.gmra.mxu1 %v1697_v25  ;;  %v2060_v25 = vld [vmem:[%s2611_s6 + $0x134] sm:$0xf0] }
  0x93   : > { %1102 = vmatmul.bf16.gmra.mxu2 %v1701_v26  ;;  %v2058_v26 = vld [vmem:[%s2611_s6 + $0x12c] sm:$0xf] }
  0x94   : > { %1191 = vmatmul.bf16.gmra.mxu3 %v1705_v27  ;;  %v1782_v27 = vld [vmem:[%s2611_s6 + $0x138] sm:$0xf0] }
  0xa1   : > { %929 = vmatmul.bf16.gmra.mxu0 %v1709_v36 }
  0xa2   : > { %1018 = vmatmul.bf16.gmra.mxu1 %v1713_v37  ;;  %v1781_v37 = vor.u32 %v2060_v25, %v1780_v24  ;;  %v2065_v25 = vld [vmem:[%s2611_s6 + $0x164] sm:$0xf] }
  0xa3   : > { %1107 = vmatmul.bf16.gmra.mxu2 %v1717_v38  ;;  %v1785_v38 = vor.u32 %v2058_v26, %v1782_v27  ;;  %v1806_v26 = vld [vmem:[%s2611_s6 + $0x170] sm:$0xf0]  ;;  %v1812_v27 = vld [vmem:[%s2611_s6 + $0x168] sm:$0xf] }
  0xa4   : > { %1196 = vmatmul.bf16.gmra.mxu3 %v1721_v39 }
  0xb1   : > { %934 = vmatmul.bf16.gmra.mxu0 %v1725_v48 }
  0xb2   : > { %1023 = vmatmul.bf16.gmra.mxu1 %v1729_v49 }
  0xb3   : > { %1112 = vmatmul.bf16.gmra.mxu2 %v1733_v50 }
  0xb4   : > { %1201 = vmatmul.bf16.gmra.mxu3 %v1737_v51 }
  0xc1   : > { %939 = vmatmul.bf16.gmra.mxu0 %v1741_v60  ;;  %v2062_v60 = vld [vmem:[%s2611_s6 + $0x14c] sm:$0xf] }
  0xc2   : > { %1028 = vmatmul.bf16.gmra.mxu1 %v1745_v61  ;;  %v1798_v61 = vld [vmem:[%s2611_s6 + $0x158] sm:$0xf0] }
  0xc3   : > { %1117 = vmatmul.bf16.gmra.mxu2 %v1749_v62 }
  0xc4   : > { %1206 = vmatmul.bf16.gmra.mxu3 %v1753_v63 }
  0xce   : > { %v905_v10 = vpop.f32.mrf.mxu0 }
  0xcf   : > { %v994_v11 = vpop.f32.mrf.mxu1 }
  0xd0   : > { %v995_v14 = vadd.f32 %v994_v11, %v905_v10 }
  0xd1   : > { %944 = vmatmul.bf16.gmra.mxu0 %v1757_v8  ;;  %v1801_v8 = vor.u32 %v2062_v60, %v1798_v61  ;;  %v1828_v60 = vld [vmem:[%s2611_s6 + $0x188] sm:$0xf]  ;;  %v2072_v61 = vld [vmem:[%s2611_s6 + $0x194] sm:$0xf0] }
  0xd2   : > { %1033 = vmatmul.bf16.gmra.mxu1 %v1761_v9 }
  0xd3   : > { %1122 = vmatmul.bf16.gmra.mxu2 %v1765_v12 }
  0xd4   : > { %1211 = vmatmul.bf16.gmra.mxu3 %v1769_v13 }
  0xd6   : > { %v1083_v15 = vpop.f32.mrf.mxu2  ;;  %v907_v17 = vpop.f32.mrf.mxu0 }
  0xd7   : > { %v1172_v16 = vpop.f32.mrf.mxu3  ;;  %v996_v18 = vpop.f32.mrf.mxu1  ;;  %v1084_v19 = vadd.f32 %v1083_v15, %v995_v14 }
  0xd8   : > { %v997_v28 = vadd.f32 %v996_v18, %v907_v17 }
  0xd9   : > { %v1173_v29 = vadd.f32 %v1172_v16, %v1084_v19 }
  0xdb   : > { %v1347_v40 = vmul.f32 %v1173_v29, %v1173_v29 }
  0xde   : > { %v1085_v30 = vpop.f32.mrf.mxu2  ;;  %v910_v35 = vpop.f32.mrf.mxu0 }
  0xdf   : > { %v1174_v31 = vpop.f32.mrf.mxu3  ;;  %v1086_v34 = vadd.f32 %v1085_v30, %v997_v28  ;;  %v999_v36 = vpop.f32.mrf.mxu1  ;;  %v2068_v28 = vld [vmem:[%s2611_s6 + $0x174] sm:$0xf0]  ;;  %v1814_v30 = vld [vmem:[%s2611_s6 + $0x178] sm:$0xf0] }
  0xe0   : > { %v1000_v41 = vadd.f32 %v999_v36, %v910_v35  ;;  %v1805_v35 = vor.u32 %v2067_v22, %v1804_v21  ;;  %v1809_v36 = vor.u32 %v2065_v25, %v1806_v26 }
  0xe1   : > { %v1175_v39 = vadd.f32 %v1174_v31, %v1086_v34  ;;  %949 = vmatmul.bf16.gmra.mxu0 %v1773_v32 }
  0xe2   : > { %1038 = vmatmul.bf16.gmra.mxu1 %v1777_v33 }
  0xe3   : > { %v2121_v42 = vpack.c.bf16 %v1175_v39, %v1173_v29  ;;  %v1316_v43 = vadd.f32 %v1175_v39, %v1173_v29  ;;  %v1348_v44 = vmul.f32 %v1175_v39, %v1175_v39  ;;  %1127 = vmatmul.bf16.gmra.mxu2 %v1781_v37  ;;  %v2066_v29 = vld [vmem:[%s2611_s6 + $0x16c] sm:$0xf] }
  0xe4   : > { %1216 = vmatmul.bf16.gmra.mxu3 %v1785_v38 }
  0xe5   : > { %2122 = vst [vmem:[%s2702_s26] sm:$0xff] %v2121_v42   ;;  %v1379_v45 = vadd.f32 %v1348_v44, %v1347_v40  ;;  %v1813_v40 = vor.u32 %v2068_v28, %v1812_v27  ;;  %v2073_v27 = vld [vmem:[%s2611_s6 + $0x1a4] sm:$0xf]  ;;  %v1838_v28 = vld [vmem:[%s2611_s6 + $0x1b0] sm:$0xf0] }
  0xe6   : > { %v1088_v46 = vpop.f32.mrf.mxu2  ;;  %v912_v49 = vpop.f32.mrf.mxu0 }
  0xe7   : > { %v1177_v47 = vpop.f32.mrf.mxu3  ;;  %v1089_v48 = vadd.f32 %v1088_v46, %v1000_v41  ;;  %v1001_v50 = vpop.f32.mrf.mxu1  ;;  %v1817_v41 = vor.u32 %v2066_v29, %v1814_v30  ;;  %v1844_v29 = vld [vmem:[%s2611_s6 + $0x1a8] sm:$0xf]  ;;  %v2076_v30 = vld [vmem:[%s2611_s6 + $0x1b4] sm:$0xf0] }
  0xe8   : > { %v1002_v63 = vadd.f32 %v1001_v50, %v912_v49 }
  0xe9   : > { %v1178_v51 = vadd.f32 %v1177_v47, %v1089_v48 }
  0xeb   : > { %v1317_v54 = vadd.f32 %v1316_v43, %v1178_v51  ;;  %v1349_v55 = vmul.f32 %v1178_v51, %v1178_v51 }
  0xed   : > { %v1380_v62 = vadd.f32 %v1379_v45, %v1349_v55  ;;  %v2071_v55 = vld [vmem:[%s2611_s6 + $0x18c] sm:$0xf0] }
  0xee   : > { %v1090_v0 = vpop.f32.mrf.mxu2  ;;  %v915_v5 = vpop.f32.mrf.mxu0 }
  0xef   : > { %v1179_v1 = vpop.f32.mrf.mxu3  ;;  %v1091_v4 = vadd.f32 %v1090_v0, %v1002_v63  ;;  %v1004_v6 = vpop.f32.mrf.mxu1  ;;  %v1830_v63 = vld [vmem:[%s2611_s6 + $0x198] sm:$0xf0] }
  0xf0   : > { %v1005_v10 = vadd.f32 %v1004_v6, %v915_v5  ;;  %v1825_v5 = vor.u32 %v2069_v58, %v1822_v59 }
  0xf1   : > { %v1180_v9 = vadd.f32 %v1179_v1, %v1091_v4  ;;  %954 = vmatmul.bf16.gmra.mxu0 %v1789_v2 }
  0xf2   : > { %1043 = vmatmul.bf16.gmra.mxu1 %v1793_v3 }
  0xf3   : > { %v2126_v11 = vpack.c.bf16 %v1180_v9, %v1178_v51  ;;  %v1318_v12 = vadd.f32 %v1317_v54, %v1180_v9  ;;  %v1350_v13 = vmul.f32 %v1180_v9, %v1180_v9  ;;  %1132 = vmatmul.bf16.gmra.mxu2 %v1797_v7  ;;  %v1820_v54 = vld [vmem:[%s2611_s6 + $0x180] sm:$0xf]  ;;  %v1829_v9 = vor.u32 %v2072_v61, %v1828_v60  ;;  %v2077_v60 = vld [vmem:[%s2611_s6 + $0x1c4] sm:$0xf]  ;;  %v1854_v61 = vld [vmem:[%s2611_s6 + $0x1d0] sm:$0xf0] }
  0xf4   : > { %1221 = vmatmul.bf16.gmra.mxu3 %v1801_v8  ;;  %v1821_v4 = vor.u32 %v2071_v55, %v1820_v54 }
  0xf5   : > { %2198 = vst [vmem:[%s2702_s26 + $0x8] sm:$0xff] %v2126_v11   ;;  %v1381_v14 = vadd.f32 %v1380_v62, %v1350_v13  ;;  %v2070_v62 = vld [vmem:[%s2611_s6 + $0x18c] sm:$0xf] }
  0xf6   : > { %v1093_v15 = vpop.f32.mrf.mxu2  ;;  %v917_v18 = vpop.f32.mrf.mxu0 }
  0xf7   : > { %v1182_v16 = vpop.f32.mrf.mxu3  ;;  %v1094_v17 = vadd.f32 %v1093_v15, %v1005_v10  ;;  %v1006_v19 = vpop.f32.mrf.mxu1  ;;  %v1833_v10 = vor.u32 %v2070_v62, %v1830_v63  ;;  %v1860_v62 = vld [vmem:[%s2611_s6 + $0x1c8] sm:$0xf]  ;;  %v2080_v63 = vld [vmem:[%s2611_s6 + $0x1d4] sm:$0xf0] }
  0xf8   : > { %v1007_v32 = vadd.f32 %v1006_v19, %v917_v18 }
  0xf9   : > { %v1183_v20 = vadd.f32 %v1182_v16, %v1094_v17 }
  0xfb   : > { %v1319_v23 = vadd.f32 %v1318_v12, %v1183_v20  ;;  %v1351_v24 = vmul.f32 %v1183_v20, %v1183_v20 }
  0xfd   : > { %v1382_v31 = vadd.f32 %v1381_v14, %v1351_v24  ;;  %v2075_v24 = vld [vmem:[%s2611_s6 + $0x1ac] sm:$0xf0] }
  0xfe   : > { %v1095_v33 = vpop.f32.mrf.mxu2  ;;  %v920_v38 = vpop.f32.mrf.mxu0 }
  0xff   : > { %v1184_v34 = vpop.f32.mrf.mxu3  ;;  %v1096_v37 = vadd.f32 %v1095_v33, %v1007_v32  ;;  %v1009_v39 = vpop.f32.mrf.mxu1  ;;  %v1846_v32 = vld [vmem:[%s2611_s6 + $0x1b8] sm:$0xf0] }
 0x100   : > { %v1010_v43 = vadd.f32 %v1009_v39, %v920_v38  ;;  %v1841_v38 = vor.u32 %v2073_v27, %v1838_v28 }
 0x101   : > { %v1185_v42 = vadd.f32 %v1184_v34, %v1096_v37  ;;  %959 = vmatmul.bf16.gmra.mxu0 %v1805_v35 }
 0x102   : > { %1048 = vmatmul.bf16.gmra.mxu1 %v1809_v36 }
 0x103   : > { %v2131_v44 = vpack.c.bf16 %v1185_v42, %v1183_v20  ;;  %v1320_v45 = vadd.f32 %v1319_v23, %v1185_v42  ;;  %v1352_v46 = vmul.f32 %v1185_v42, %v1185_v42  ;;  %1137 = vmatmul.bf16.gmra.mxu2 %v1813_v40  ;;  %v1836_v23 = vld [vmem:[%s2611_s6 + $0x1a0] sm:$0xf]  ;;  %v1845_v42 = vor.u32 %v2076_v30, %v1844_v29  ;;  %v2081_v29 = vld [vmem:[%s2611_s6 + $0x1e4] sm:$0xf]  ;;  %v1870_v30 = vld [vmem:[%s2611_s6 + $0x1f0] sm:$0xf0] }
 0x104   : > { %1226 = vmatmul.bf16.gmra.mxu3 %v1817_v41  ;;  %v1837_v37 = vor.u32 %v2075_v24, %v1836_v23 }
 0x105   : > { %2199 = vst [vmem:[%s2702_s26 + $0x10] sm:$0xff] %v2131_v44   ;;  %v1383_v47 = vadd.f32 %v1382_v31, %v1352_v46  ;;  %v2074_v31 = vld [vmem:[%s2611_s6 + $0x1ac] sm:$0xf] }
 0x106   : > { %v1098_v48 = vpop.f32.mrf.mxu2  ;;  %v922_v51 = vpop.f32.mrf.mxu0 }
 0x107   : > { %v1187_v49 = vpop.f32.mrf.mxu3  ;;  %v1099_v50 = vadd.f32 %v1098_v48, %v1010_v43  ;;  %v1011_v52 = vpop.f32.mrf.mxu1  ;;  %v1849_v43 = vor.u32 %v2074_v31, %v1846_v32  ;;  %v1876_v31 = vld [vmem:[%s2611_s6 + $0x1e8] sm:$0xf]  ;;  %v2084_v32 = vld [vmem:[%s2611_s6 + $0x1f4] sm:$0xf0] }
 0x108   : > { %v1012_v1 = vadd.f32 %v1011_v52, %v922_v51 }
 0x109   : > { %v1188_v53 = vadd.f32 %v1187_v49, %v1099_v50 }
 0x10b   : > { %v1321_v56 = vadd.f32 %v1320_v45, %v1188_v53  ;;  %v1353_v57 = vmul.f32 %v1188_v53, %v1188_v53 }
 0x10d   : > { %v1384_v0 = vadd.f32 %v1383_v47, %v1353_v57  ;;  %v2079_v57 = vld [vmem:[%s2611_s6 + $0x1cc] sm:$0xf0] }
 0x10e   : > { %v1100_v2 = vpop.f32.mrf.mxu2  ;;  %v925_v7 = vpop.f32.mrf.mxu0 }
 0x10f   : > { %v1189_v3 = vpop.f32.mrf.mxu3  ;;  %v1101_v6 = vadd.f32 %v1100_v2, %v1012_v1  ;;  %v1014_v8 = vpop.f32.mrf.mxu1  ;;  %v1862_v1 = vld [vmem:[%s2611_s6 + $0x1d8] sm:$0xf0] }
 0x110   : > { %v1015_v12 = vadd.f32 %v1014_v8, %v925_v7  ;;  %v1857_v7 = vor.u32 %v2077_v60, %v1854_v61 }
 0x111   : > { %v1190_v11 = vadd.f32 %v1189_v3, %v1101_v6  ;;  %964 = vmatmul.bf16.gmra.mxu0 %v1821_v4 }
 0x112   : > { %1053 = vmatmul.bf16.gmra.mxu1 %v1825_v5 }
 0x113   : > { %v2136_v13 = vpack.c.bf16 %v1190_v11, %v1188_v53  ;;  %v1322_v14 = vadd.f32 %v1321_v56, %v1190_v11  ;;  %v1354_v15 = vmul.f32 %v1190_v11, %v1190_v11  ;;  %1142 = vmatmul.bf16.gmra.mxu2 %v1829_v9  ;;  %v1852_v56 = vld [vmem:[%s2611_s6 + $0x1c0] sm:$0xf]  ;;  %v1861_v11 = vor.u32 %v2080_v63, %v1860_v62 }
 0x114   : > { %1231 = vmatmul.bf16.gmra.mxu3 %v1833_v10  ;;  %v1853_v6 = vor.u32 %v2079_v57, %v1852_v56 }
 0x115   : > { %2200 = vst [vmem:[%s2702_s26 + $0x18] sm:$0xff] %v2136_v13   ;;  %v1385_v16 = vadd.f32 %v1384_v0, %v1354_v15  ;;  %v2078_v0 = vld [vmem:[%s2611_s6 + $0x1cc] sm:$0xf] }
 0x116   : > { %v1103_v17 = vpop.f32.mrf.mxu2  ;;  %v927_v20 = vpop.f32.mrf.mxu0 }
 0x117   : > { %v1192_v18 = vpop.f32.mrf.mxu3  ;;  %v1104_v19 = vadd.f32 %v1103_v17, %v1015_v12  ;;  %v1016_v21 = vpop.f32.mrf.mxu1  ;;  %v1865_v12 = vor.u32 %v2078_v0, %v1862_v1 }
 0x118   : > { %v1017_v34 = vadd.f32 %v1016_v21, %v927_v20 }
 0x119   : > { %v1193_v22 = vadd.f32 %v1192_v18, %v1104_v19 }
 0x11b   : > { %v1323_v25 = vadd.f32 %v1322_v14, %v1193_v22  ;;  %v1355_v26 = vmul.f32 %v1193_v22, %v1193_v22 }
 0x11d   : > { %v1386_v33 = vadd.f32 %v1385_v16, %v1355_v26  ;;  %v2083_v26 = vld [vmem:[%s2611_s6 + $0x1ec] sm:$0xf0] }
 0x11e   : > { %v1105_v35 = vpop.f32.mrf.mxu2  ;;  %v930_v40 = vpop.f32.mrf.mxu0 }
 0x11f   : > { %v1194_v36 = vpop.f32.mrf.mxu3  ;;  %v1106_v39 = vadd.f32 %v1105_v35, %v1017_v34  ;;  %v1019_v41 = vpop.f32.mrf.mxu1  ;;  %v1878_v34 = vld [vmem:[%s2611_s6 + $0x1f8] sm:$0xf0] }
 0x120   : > { %v1020_v45 = vadd.f32 %v1019_v41, %v930_v40  ;;  %v1873_v40 = vor.u32 %v2081_v29, %v1870_v30 }
 0x121   : > { %v1195_v44 = vadd.f32 %v1194_v36, %v1106_v39  ;;  %969 = vmatmul.bf16.gmra.mxu0 %v1837_v37 }
 0x122   : > { %1058 = vmatmul.bf16.gmra.mxu1 %v1841_v38 }
 0x123   : > { %v2141_v46 = vpack.c.bf16 %v1195_v44, %v1193_v22  ;;  %v1324_v47 = vadd.f32 %v1323_v25, %v1195_v44  ;;  %v1356_v48 = vmul.f32 %v1195_v44, %v1195_v44  ;;  %1147 = vmatmul.bf16.gmra.mxu2 %v1845_v42  ;;  %v1868_v25 = vld [vmem:[%s2611_s6 + $0x1e0] sm:$0xf]  ;;  %v1877_v44 = vor.u32 %v2084_v32, %v1876_v31 }
 0x124   : > { %1236 = vmatmul.bf16.gmra.mxu3 %v1849_v43  ;;  %v1869_v39 = vor.u32 %v2083_v26, %v1868_v25 }
 0x125   : > { %2201 = vst [vmem:[%s2702_s26 + $0x20] sm:$0xff] %v2141_v46   ;;  %v1387_v49 = vadd.f32 %v1386_v33, %v1356_v48  ;;  %v2082_v33 = vld [vmem:[%s2611_s6 + $0x1ec] sm:$0xf]  ;;  %s1454_s6 = sshll.u32 %s1450_s12, 4  ;;  %s1466_s12 = sshll.u32 %s253_s27, 4  ;;  %s2797_s6 = int_to_ptr.hbm [resolvable:$true] %s1454_s6  ;;  %s2806_s12 = int_to_ptr.vmem [resolvable:$true] %s1466_s12 }
 0x126   : > { %v1108_v50 = vpop.f32.mrf.mxu2  ;;  %v932_v53 = vpop.f32.mrf.mxu0  ;;  %s2360_s5 = sshra.s32 %s2797_s6, 4  ;;  %s2361_s5 = int_to_ptr.hbm [resolvable:$true] %s2360_s5 }
 0x127   : > { %v1197_v51 = vpop.f32.mrf.mxu3  ;;  %v1109_v52 = vadd.f32 %v1108_v50, %v1020_v45  ;;  %v1021_v54 = vpop.f32.mrf.mxu1  ;;  %v1881_v45 = vor.u32 %v2082_v33, %v1878_v34  ;;  %s2362_s21 = scalar_lea.hbm %s2361_s5, 8  ;;  %p2367_p11 = scmp.lt.s32.totalorder %s2361_s5, %s2879_s3 }
 0x128   : > { %v1022_v3 = vadd.f32 %v1021_v54, %v932_v53  ;;  %p2363_p1 = scmp.ne.s32.totalorder %s2361_s5, %s2362_s21 }
 0x129   : > { %v1198_v55 = vadd.f32 %v1197_v51, %v1109_v52 }
 0x12a   : > { %p2364_p4 = pnand %p2363_p1, %p2579_p7 }
 0x12b   : > { %v1325_v58 = vadd.f32 %v1324_v47, %v1198_v55  ;;  %v1357_v59 = vmul.f32 %v1198_v55, %v1198_v55 }
 0x12c   : > { %p2365_p8 = pneg %p2364_p4 }
 0x12d   : > { %v1388_v2 = vadd.f32 %v1387_v49, %v1357_v59 }
 0x12e   : > { %v1110_v4 = vpop.f32.mrf.mxu2  ;;  %v935_v9 = vpop.f32.mrf.mxu0 }
 0x12f   : > { %v1199_v5 = vpop.f32.mrf.mxu3  ;;  %v1111_v8 = vadd.f32 %v1110_v4, %v1022_v3  ;;  %v1024_v10 = vpop.f32.mrf.mxu1 }
 0x130   : > { %v1025_v14 = vadd.f32 %v1024_v10, %v935_v9 }
 0x131   : > { %v1200_v13 = vadd.f32 %v1199_v5, %v1111_v8  ;;  %974 = vmatmul.bf16.gmra.mxu0 %v1853_v6 }
 0x132   : > { %1063 = vmatmul.bf16.gmra.mxu1 %v1857_v7 }
 0x133   : > { %v2146_v15 = vpack.c.bf16 %v1200_v13, %v1198_v55  ;;  %v1326_v16 = vadd.f32 %v1325_v58, %v1200_v13  ;;  %v1358_v17 = vmul.f32 %v1200_v13, %v1200_v13  ;;  %1152 = vmatmul.bf16.gmra.mxu2 %v1861_v11 }
 0x134   : > { %1241 = vmatmul.bf16.gmra.mxu3 %v1865_v12 }
 0x135   : > { %2202 = vst [vmem:[%s2702_s26 + $0x28] sm:$0xff] %v2146_v15   ;;  %v1389_v18 = vadd.f32 %v1388_v2, %v1358_v17 }
 0x136   : > { %v1113_v19 = vpop.f32.mrf.mxu2  ;;  %v937_v22 = vpop.f32.mrf.mxu0 }
 0x137   : > { %v1202_v20 = vpop.f32.mrf.mxu3  ;;  %v1114_v21 = vadd.f32 %v1113_v19, %v1025_v14  ;;  %v1026_v23 = vpop.f32.mrf.mxu1 }
 0x138   : > { %v1027_v36 = vadd.f32 %v1026_v23, %v937_v22 }
 0x139   : > { %v1203_v24 = vadd.f32 %v1202_v20, %v1114_v21 }
 0x13b   : > { %v1327_v27 = vadd.f32 %v1326_v16, %v1203_v24  ;;  %v1359_v28 = vmul.f32 %v1203_v24, %v1203_v24 }
 0x13d   : > { %v1390_v35 = vadd.f32 %v1389_v18, %v1359_v28 }
 0x13e   : > { %v1115_v37 = vpop.f32.mrf.mxu2  ;;  %v940_v42 = vpop.f32.mrf.mxu0 }
 0x13f   : > { %v1204_v38 = vpop.f32.mrf.mxu3  ;;  %v1116_v41 = vadd.f32 %v1115_v37, %v1027_v36  ;;  %v1029_v43 = vpop.f32.mrf.mxu1 }
 0x140   : > { %v1030_v47 = vadd.f32 %v1029_v43, %v940_v42 }
 0x141   : > { %v1205_v46 = vadd.f32 %v1204_v38, %v1116_v41  ;;  %979 = vmatmul.bf16.gmra.mxu0 %v1869_v39 }
 0x142   : > { %1068 = vmatmul.bf16.gmra.mxu1 %v1873_v40 }
 0x143   : > { %v2151_v48 = vpack.c.bf16 %v1205_v46, %v1203_v24  ;;  %v1328_v49 = vadd.f32 %v1327_v27, %v1205_v46  ;;  %v1360_v50 = vmul.f32 %v1205_v46, %v1205_v46  ;;  %1157 = vmatmul.bf16.gmra.mxu2 %v1877_v44 }
 0x144   : > { %1246 = vmatmul.bf16.gmra.mxu3 %v1881_v45 }
 0x145   : > { %2203 = vst [vmem:[%s2702_s26 + $0x30] sm:$0xff] %v2151_v48   ;;  %v1391_v51 = vadd.f32 %v1390_v35, %v1360_v50 }
 0x146   : > { %v1118_v52 = vpop.f32.mrf.mxu2  ;;  %v942_v55 = vpop.f32.mrf.mxu0 }
 0x147   : > { %v1207_v53 = vpop.f32.mrf.mxu3  ;;  %v1119_v54 = vadd.f32 %v1118_v52, %v1030_v47  ;;  %v1031_v56 = vpop.f32.mrf.mxu1 }
 0x148   : > { %v1032_v61 = vadd.f32 %v1031_v56, %v942_v55 }
 0x149   : > { %v1208_v57 = vadd.f32 %v1207_v53, %v1119_v54 }
 0x14b   : > { %v1329_v58 = vadd.f32 %v1328_v49, %v1208_v57  ;;  %v1361_v59 = vmul.f32 %v1208_v57, %v1208_v57 }
 0x14d   : > { %v1392_v60 = vadd.f32 %v1391_v51, %v1361_v59 }
 0x14e   : > { %v1120_v62 = vpop.f32.mrf.mxu2  ;;  %v945_v1 = vpop.f32.mrf.mxu0 }
 0x14f   : > { %v1209_v63 = vpop.f32.mrf.mxu3  ;;  %v1121_v0 = vadd.f32 %v1120_v62, %v1032_v61  ;;  %v1034_v2 = vpop.f32.mrf.mxu1 }
 0x150   : > { %v1035_v7 = vadd.f32 %v1034_v2, %v945_v1 }
 0x151   : > { %v1210_v3 = vadd.f32 %v1209_v63, %v1121_v0 }
 0x153   : > { %v2156_v4 = vpack.c.bf16 %v1210_v3, %v1208_v57  ;;  %v1330_v5 = vadd.f32 %v1329_v58, %v1210_v3  ;;  %v1362_v6 = vmul.f32 %v1210_v3, %v1210_v3 }
 0x155   : > { %2204 = vst [vmem:[%s2702_s26 + $0x38] sm:$0xff] %v2156_v4   ;;  %v1393_v8 = vadd.f32 %v1392_v60, %v1362_v6 }
 0x156   : > { %v1123_v9 = vpop.f32.mrf.mxu2  ;;  %v947_v12 = vpop.f32.mrf.mxu0 }
 0x157   : > { %v1212_v10 = vpop.f32.mrf.mxu3  ;;  %v1124_v11 = vadd.f32 %v1123_v9, %v1035_v7  ;;  %v1036_v13 = vpop.f32.mrf.mxu1 }
 0x158   : > { %v1037_v18 = vadd.f32 %v1036_v13, %v947_v12 }
 0x159   : > { %v1213_v14 = vadd.f32 %v1212_v10, %v1124_v11 }
 0x15b   : > { %v1331_v15 = vadd.f32 %v1330_v5, %v1213_v14  ;;  %v1363_v16 = vmul.f32 %v1213_v14, %v1213_v14 }
 0x15d   : > { %v1394_v17 = vadd.f32 %v1393_v8, %v1363_v16 }
 0x15e   : > { %v1125_v19 = vpop.f32.mrf.mxu2  ;;  %v950_v22 = vpop.f32.mrf.mxu0 }
 0x15f   : > { %v1214_v20 = vpop.f32.mrf.mxu3  ;;  %v1126_v21 = vadd.f32 %v1125_v19, %v1037_v18  ;;  %v1039_v23 = vpop.f32.mrf.mxu1 }
 0x160   : > { %v1040_v28 = vadd.f32 %v1039_v23, %v950_v22 }
 0x161   : > { %v1215_v24 = vadd.f32 %v1214_v20, %v1126_v21 }
 0x163   : > { %v2161_v25 = vpack.c.bf16 %v1215_v24, %v1213_v14  ;;  %v1332_v26 = vadd.f32 %v1331_v15, %v1215_v24  ;;  %v1364_v27 = vmul.f32 %v1215_v24, %v1215_v24 }
 0x165   : > { %2205 = vst [vmem:[%s2702_s26 + $0x40] sm:$0xff] %v2161_v25   ;;  %v1395_v29 = vadd.f32 %v1394_v17, %v1364_v27 }
 0x166   : > { %v1128_v30 = vpop.f32.mrf.mxu2  ;;  %v952_v33 = vpop.f32.mrf.mxu0 }
 0x167   : > { %v1217_v31 = vpop.f32.mrf.mxu3  ;;  %v1129_v32 = vadd.f32 %v1128_v30, %v1040_v28  ;;  %v1041_v34 = vpop.f32.mrf.mxu1 }
 0x168   : > { %v1042_v39 = vadd.f32 %v1041_v34, %v952_v33 }
 0x169   : > { %v1218_v35 = vadd.f32 %v1217_v31, %v1129_v32 }
 0x16b   : > { %v1333_v36 = vadd.f32 %v1332_v26, %v1218_v35  ;;  %v1365_v37 = vmul.f32 %v1218_v35, %v1218_v35 }
 0x16d   : > { %v1396_v38 = vadd.f32 %v1395_v29, %v1365_v37 }
 0x16e   : > { %v1130_v40 = vpop.f32.mrf.mxu2  ;;  %v955_v43 = vpop.f32.mrf.mxu0 }
 0x16f   : > { %v1219_v41 = vpop.f32.mrf.mxu3  ;;  %v1131_v42 = vadd.f32 %v1130_v40, %v1042_v39  ;;  %v1044_v44 = vpop.f32.mrf.mxu1 }
 0x170   : > { %v1045_v54 = vadd.f32 %v1044_v44, %v955_v43 }
 0x171   : > { %v1220_v45 = vadd.f32 %v1219_v41, %v1131_v42 }
 0x173   : > { %v2166_v46 = vpack.c.bf16 %v1220_v45, %v1218_v35  ;;  %v2761_v47 = vadd.f32 %v1333_v36, %v1220_v45  ;;  %v1366_v48 = vmul.f32 %v1220_v45, %v1220_v45 }
 0x175   : > { %2206 = vst [vmem:[%s2702_s26 + $0x48] sm:$0xff] %v2166_v46   ;;  %v2764_v49 = vadd.f32 %v1396_v38, %v1366_v48 }
 0x176   : > { %v1133_v50 = vpop.f32.mrf.mxu2  ;;  %v957_v52 = vpop.f32.mrf.mxu0 }
 0x177   : > { %v1222_v51 = vpop.f32.mrf.mxu3  ;;  %v1046_v53 = vpop.f32.mrf.mxu1  ;;  %v1134_v55 = vadd.f32 %v1133_v50, %v1045_v54 }
 0x178   : > { %v1047_v56 = vadd.f32 %v1046_v53, %v957_v52 }
 0x179   : > { %v1223_v62 = vadd.f32 %v1222_v51, %v1134_v55 }
 0x17b   : > { %v1367_v53 = vmul.f32 %v1223_v62, %v1223_v62  ;;  %v1335_v55 = vadd.f32 %v2761_v47, %v1223_v62 }
 0x17e   : > { %v1135_v57 = vpop.f32.mrf.mxu2  ;;  %v960_v60 = vpop.f32.mrf.mxu0 }
 0x17f   : > { %v1224_v58 = vpop.f32.mrf.mxu3  ;;  %v1136_v59 = vadd.f32 %v1135_v57, %v1047_v56  ;;  %v1049_v61 = vpop.f32.mrf.mxu1 }
 0x180   : > { %v1050_v5 = vadd.f32 %v1049_v61, %v960_v60 }
 0x181   : > { %v2766_v63 = vadd.f32 %v1224_v58, %v1136_v59  ;;  %v1398_v58 = vadd.f32 %v2764_v49, %v1367_v53 }
 0x183   : > { %v2171_v0 = vpack.c.bf16 %v2766_v63, %v1223_v62  ;;  %v1368_v54 = vmul.f32 %v2766_v63, %v2766_v63 }
 0x185   : > { %2207 = vst [vmem:[%s2702_s26 + $0x50] sm:$0xff] %v2171_v0   ;;  %v1336_v0 = vadd.f32 %v1335_v55, %v2766_v63 }
 0x186   : > { %v1138_v1 = vpop.f32.mrf.mxu2  ;;  %v962_v3 = vpop.f32.mrf.mxu0 }
 0x187   : > { %v1227_v2 = vpop.f32.mrf.mxu3  ;;  %v1051_v4 = vpop.f32.mrf.mxu1  ;;  %v1139_v6 = vadd.f32 %v1138_v1, %v1050_v5 }
 0x188   : > { %v1052_v7 = vadd.f32 %v1051_v4, %v962_v3 }
 0x189   : > { %v1228_v13 = vadd.f32 %v1227_v2, %v1139_v6  ;;  %v1399_v2 = vadd.f32 %v1398_v58, %v1368_v54 }
 0x18b   : > { %v1369_v59 = vmul.f32 %v1228_v13, %v1228_v13  ;;  %v1337_v5 = vadd.f32 %v1336_v0, %v1228_v13 }
 0x18d   : > { %v1400_v47 = vadd.f32 %v1399_v2, %v1369_v59 }
 0x18e   : > { %v1140_v8 = vpop.f32.mrf.mxu2  ;;  %v965_v11 = vpop.f32.mrf.mxu0 }
 0x18f   : > { %v1229_v9 = vpop.f32.mrf.mxu3  ;;  %v1141_v10 = vadd.f32 %v1140_v8, %v1052_v7  ;;  %v1054_v12 = vpop.f32.mrf.mxu1 }
 0x190   : > { %v1055_v20 = vadd.f32 %v1054_v12, %v965_v11 }
 0x191   : > { %v1230_v14 = vadd.f32 %v1229_v9, %v1141_v10 }
 0x193   : > { %v2176_v15 = vpack.c.bf16 %v1230_v14, %v1228_v13  ;;  %v1370_v6 = vmul.f32 %v1230_v14, %v1230_v14  ;;  %v1338_v62 = vadd.f32 %v1337_v5, %v1230_v14 }
 0x195   : > { %2208 = vst [vmem:[%s2702_s26 + $0x58] sm:$0xff] %v2176_v15   ;;  %v1401_v11 = vadd.f32 %v1400_v47, %v1370_v6 }
 0x196   : > { %v1143_v16 = vpop.f32.mrf.mxu2  ;;  %v967_v18 = vpop.f32.mrf.mxu0 }
 0x197   : > { %v1232_v17 = vpop.f32.mrf.mxu3  ;;  %v1056_v19 = vpop.f32.mrf.mxu1  ;;  %v1144_v21 = vadd.f32 %v1143_v16, %v1055_v20 }
 0x198   : > { %v1057_v22 = vadd.f32 %v1056_v19, %v967_v18 }
 0x199   : > { %v1233_v28 = vadd.f32 %v1232_v17, %v1144_v21 }
 0x19b   : > { %v1371_v9 = vmul.f32 %v1233_v28, %v1233_v28  ;;  %v1339_v12 = vadd.f32 %v1338_v62, %v1233_v28 }
 0x19d   : > { %v1402_v17 = vadd.f32 %v1401_v11, %v1371_v9 }
 0x19e   : > { %v1145_v23 = vpop.f32.mrf.mxu2  ;;  %v970_v26 = vpop.f32.mrf.mxu0 }
 0x19f   : > { %v1234_v24 = vpop.f32.mrf.mxu3  ;;  %v1146_v25 = vadd.f32 %v1145_v23, %v1057_v22  ;;  %v1059_v27 = vpop.f32.mrf.mxu1 }
 0x1a0   : > { %v1060_v35 = vadd.f32 %v1059_v27, %v970_v26 }
 0x1a1   : > { %v1235_v29 = vadd.f32 %v1234_v24, %v1146_v25 }
 0x1a3   : > { %v2181_v30 = vpack.c.bf16 %v1235_v29, %v1233_v28  ;;  %v1372_v15 = vmul.f32 %v1235_v29, %v1235_v29  ;;  %v1340_v18 = vadd.f32 %v1339_v12, %v1235_v29 }
 0x1a5   : > { %2209 = vst [vmem:[%s2702_s26 + $0x60] sm:$0xff] %v2181_v30   ;;  %v1403_v20 = vadd.f32 %v1402_v17, %v1372_v15 }
 0x1a6   : > { %v1148_v31 = vpop.f32.mrf.mxu2  ;;  %v972_v33 = vpop.f32.mrf.mxu0 }
 0x1a7   : > { %v1237_v32 = vpop.f32.mrf.mxu3  ;;  %v1061_v34 = vpop.f32.mrf.mxu1  ;;  %v1149_v36 = vadd.f32 %v1148_v31, %v1060_v35 }
 0x1a8   : > { %v1062_v37 = vadd.f32 %v1061_v34, %v972_v33 }
 0x1a9   : > { %v1238_v43 = vadd.f32 %v1237_v32, %v1149_v36 }
 0x1ab   : > { %v1373_v13 = vmul.f32 %v1238_v43, %v1238_v43  ;;  %v1341_v21 = vadd.f32 %v1340_v18, %v1238_v43 }
 0x1ad   : > { %v1404_v24 = vadd.f32 %v1403_v20, %v1373_v13 }
 0x1ae   : > { %v1150_v38 = vpop.f32.mrf.mxu2  ;;  %v975_v41 = vpop.f32.mrf.mxu0 }
 0x1af   : > { %v1239_v39 = vpop.f32.mrf.mxu3  ;;  %v1151_v40 = vadd.f32 %v1150_v38, %v1062_v37  ;;  %v1064_v42 = vpop.f32.mrf.mxu1 }
 0x1b0   : > { %v1065_v52 = vadd.f32 %v1064_v42, %v975_v41 }
 0x1b1   : > { %v1240_v44 = vadd.f32 %v1239_v39, %v1151_v40 }
 0x1b3   : > { %v2186_v45 = vpack.c.bf16 %v1240_v44, %v1238_v43  ;;  %v1374_v14 = vmul.f32 %v1240_v44, %v1240_v44  ;;  %v1342_v25 = vadd.f32 %v1341_v21, %v1240_v44 }
 0x1b5   : > { %2210 = vst [vmem:[%s2702_s26 + $0x68] sm:$0xff] %v2186_v45   ;;  %v1405_v28 = vadd.f32 %v1404_v24, %v1374_v14 }
 0x1b6   : > { %v1153_v46 = vpop.f32.mrf.mxu2  ;;  %v977_v50 = vpop.f32.mrf.mxu0 }
 0x1b7   : > { %v1242_v48 = vpop.f32.mrf.mxu3  ;;  %v1066_v51 = vpop.f32.mrf.mxu1  ;;  %v1154_v56 = vadd.f32 %v1153_v46, %v1065_v52 }
 0x1b8   : > { %v1067_v57 = vadd.f32 %v1066_v51, %v977_v50 }
 0x1b9   : > { %v1243_v7 = vadd.f32 %v1242_v48, %v1154_v56 }
 0x1bb   : > { %v1375_v26 = vmul.f32 %v1243_v7, %v1243_v7  ;;  %v1343_v29 = vadd.f32 %v1342_v25, %v1243_v7 }
 0x1bd   : > { %v1406_v33 = vadd.f32 %v1405_v28, %v1375_v26 }
 0x1be   : > { %v1155_v60 = vpop.f32.mrf.mxu2  ;;  %v980_v3 = vpop.f32.mrf.mxu0 }
 0x1bf   : > { %v1244_v61 = vpop.f32.mrf.mxu3  ;;  %v1156_v1 = vadd.f32 %v1155_v60, %v1067_v57  ;;  %v1069_v4 = vpop.f32.mrf.mxu1 }
 0x1c0   : > { %v1070_v49 = vadd.f32 %v1069_v4, %v980_v3 }
 0x1c1   : > { %v1245_v8 = vadd.f32 %v1244_v61, %v1156_v1 }
 0x1c3   : > { %v2191_v10 = vpack.c.bf16 %v1245_v8, %v1243_v7  ;;  %v1376_v30 = vmul.f32 %v1245_v8, %v1245_v8  ;;  %v1344_v34 = vadd.f32 %v1343_v29, %v1245_v8 }
 0x1c5   : > { %2211 = vst [vmem:[%s2702_s26 + $0x70] sm:$0xff] %v2191_v10   ;;  %v1407_v38 = vadd.f32 %v1406_v33, %v1376_v30 }
 0x1c6   : > { %v1158_v63 = vpop.f32.mrf.mxu2  ;;  %v982_v22 = vpop.f32.mrf.mxu0 }
 0x1c7   : > { %v1247_v16 = vpop.f32.mrf.mxu3  ;;  %v1159_v19 = vadd.f32 %v1158_v63, %v1070_v49  ;;  %v1071_v23 = vpop.f32.mrf.mxu1 }
 0x1c8   : > { %v1072_v31 = vadd.f32 %v1071_v23, %v982_v22 }
 0x1c9   : > { %v1248_v27 = vadd.f32 %v1247_v16, %v1159_v19 }
 0x1cb   : > { %v1377_v35 = vmul.f32 %v1248_v27, %v1248_v27  ;;  %v1345_v39 = vadd.f32 %v1344_v34, %v1248_v27 }
 0x1cd   : > { %v1408_v41 = vadd.f32 %v1407_v38, %v1377_v35 }
 0x1ce   : > { %v1160_v32 = vpop.f32.mrf.mxu2 }
 0x1cf   : > { %v1161_v36 = vadd.f32 %v1160_v32, %v1072_v31  ;;  %v1249_v37 = vpop.f32.mrf.mxu3 }
 0x1d1   : > { %v1250_v40 = vadd.f32 %v1249_v37, %v1161_v36 }
 0x1d3   : > { %v2196_v42 = vpack.c.bf16 %v1250_v40, %v1248_v27  ;;  %v1346_v43 = vadd.f32 %v1345_v39, %v1250_v40  ;;  %v1378_v44 = vmul.f32 %v1250_v40, %v1250_v40 }
 0x1d5   : > { %2212 = vst [vmem:[%s2702_s26 + $0x78] sm:$0xff] %v2196_v42   ;;  %v1409_v45 = vadd.f32 %v1408_v41, %v1378_v44  ;;  %s2366_s26 = scalar_lea.hbm %s2879_s3, 16 }
 0x1d6   : > { %1410 = vst [vmem:[%s246_s14] sm:$0xff] %v1346_v43  ;;  %p2368_p9 = scmp.lt.s32.totalorder %s2366_s26, %s2362_s21 }
 0x1d8   : > { %p2369_p2 = por %p2368_p9, %p2367_p11 }
 0x1da   : > { %p2370_p10 = pnand %p2369_p2, %p2365_p8 }
 0x1dc   : > { %2373 = shalt.err (!%p2370_p10)
}
 0x1dd   : > { %2220 = dma.vmem_to_hbm [thread:$0]  (%p2579_p7), %s2794_s10, 128, %s2797_s6, %s2812_s7   ;;  %1411 = vst [vmem:[%s253_s27] sm:$0xff] %v1409_v45 }
 0x1de   : > { %s1413_s19 = scalar_lea.sflag [#allocation4], %s2607_s25  ;;  %s2388_s13 = sshra.s32 %s2803_s23, 4  ;;  %s2389_s13 = int_to_ptr.hbm [resolvable:$true] %s2388_s13 }
 0x1df   : > { %s2390_s24 = scalar_lea.hbm %s2389_s13, 128  ;;  %s2394_s30 = scalar_lea.hbm %s2878_s2, 256 }
 0x1e0   : > { %p2391_p12 = scmp.ne.s32.totalorder %s2389_s13, %s2390_s24  ;;  %p2395_p3 = scmp.lt.s32.totalorder %s2389_s13, %s2878_s2 }
 0x1e1   : > { %p2396_p5 = scmp.lt.s32.totalorder %s2394_s30, %s2390_s24 }
 0x1e2   : > { %p2392_p13 = pnand %p2391_p12, %p2579_p7 }
 0x1e3   : > { %p2397_p1 = por %p2396_p5, %p2395_p3 }
 0x1e4   : > { %p2393_p0 = pneg %p2392_p13 }
 0x1e6   : > { %p2398_p4 = pnand %p2397_p1, %p2393_p0 }
 0x1e8   : > { %2401 = shalt.err (!%p2398_p4)
}
 0x1e9   : > { %s2483_s25 = smov 64   ;;  %s2484_s10 = smov 4  }
 0x1ea   : > { %2219 = dma.vmem_to_hbm [thread:$0]  (%p2579_p7), %s2801_s20, 2048, %s2803_s23, %s1413_s19, %s2483_s25, %s2483_s25, %s2484_s10  }
 0x1eb   : > { %s2416_s6 = sshra.s32 %s2808_s28, 4  ;;  %s2422_s24 = scalar_lea.hbm %s2880_s4, 16  ;;  %s2417_s6 = int_to_ptr.hbm [resolvable:$true] %s2416_s6 }
 0x1ec   : > { %s2418_s27 = scalar_lea.hbm %s2417_s6, 8  ;;  %p2423_p2 = scmp.lt.s32.totalorder %s2417_s6, %s2880_s4 }
 0x1ed   : > { %p2419_p8 = scmp.ne.s32.totalorder %s2417_s6, %s2418_s27  ;;  %p2424_p10 = scmp.lt.s32.totalorder %s2422_s24, %s2418_s27 }
 0x1ef   : > { %p2420_p11 = pnand %p2419_p8, %p2579_p7  ;;  %p2425_p12 = por %p2424_p10, %p2423_p2 }
 0x1f1   : > { %p2421_p9 = pneg %p2420_p11 }
 0x1f3   : > { %p2426_p13 = pnand %p2425_p12, %p2421_p9 }
 0x1f5   : > { %2429 = shalt.err (!%p2426_p13)
}
 0x1f6   : > { %2221 = dma.vmem_to_hbm [thread:$0]  (%p2579_p7), %s2806_s12, 128, %s2808_s28, %s2812_s7  }
 0x1f7 PF: > { %s1480_s20 = sand.u32 1, %s2464_s15   ;;  %p2887_p0 = scmp.ge.s32.totalorder %s2476_s18, 2 }
 0x1f8   : > { %s1481_s23 = scalar_lea.sflag [#allocation4], %s1480_s20 }
 0x1f9   : > { %p2234_p3 = pnand %p2887_p0, %p2547_p6 }
 0x1fb   : > { %p2235_p5 = pneg %p2234_p3 }
 0x1fd   : > { %2455 = dma.done.wait (%p2235_p5), %s1481_s23, 2048  }
 0x1fe   : > { %2457 = vsyncadd (%p2235_p5), %s1481_s23, 4294965248  ;;  %s2888_s19 = sadd.s32 4294967294, %s2476_s18  }
 0x1ff   : > { %s1490_s30 = sand.u32 1, %s2888_s19  }
 0x200   : > { %s1491_s9 = scalar_lea.sflag [#allocation9], %s1490_s30 }
 0x201   : > { %2459 = dma.done.wait (%p2235_p5), %s1491_s9, 256  }
 0x202   : > { %2461 = vsyncadd (%p2235_p5), %s1491_s9, 4294967040  ;;  %p22_p7 = scmp.ge.s32.totalorder %s2565_s29, 4   ;;  %s2889_s15 = smov %s2468_s16 }
 0x203   : > { %s2890_s16 = smov %s2472_s17  ;;  %s2891_s17 = smov %s2575_s8 }
 0x204   : > { %s2892_s18 = smov %s2565_s29  ;;  %24 = sbr.rel (!%p22_p7) target bundleno = 8 (0x8), region = 109 }
 0x209   :  { %1507 = vsyncpa [#allocation3], 1 }
 0x20a   :  { %1509 = vsyncpa [#allocation3 + $0x1], 1 }
 0x20b   :  { %1510 = vsyncpa [#allocation6], 1 }
 0x20c   :  { %1511 = vsyncpa [#allocation4], 1 }
 0x20d   :  { %1513 = vsyncpa [#allocation4 + $0x1], 1 }
 0x20e   :  { %1514 = vsyncpa [#allocation9], 1 }
 0x20f   :  { %1516 = vsyncpa [#allocation9 + $0x1], 1 }

</bundles_post_ra>
